<compile_context>
chip_gen: v7x
topology: tpu7x:2x2x1
jax: 0.10.0
libtpu: 0.0.40
codegen_flags: <defaults>
</compile_context>

<pallas_src>
import functools

import jax
import jax.numpy as jnp
import numpy as np
from jax import lax
from jax.experimental import pallas as pl
from jax.experimental.pallas import tpu as pltpu

MXU_DT = jnp.bfloat16      # MXU operand dtype (accumulation is always f32)
LANES = 128                # lane width -> padded feature dimension
SUBLANES = 8


def _round_up(x, m):
    return ((x + m - 1) // m) * m


def _onehot(cond):
    # bool -> {0,1} in bf16 (exact); goes straight to the MXU.
    return jnp.where(cond, 1.0, 0.0).astype(MXU_DT)


# ---------------------------------------------------------------------------
# Kernel 1: fused GIN layer
#   grid = (node_tiles [parallel], edge_chunks [arbitrary])
#   per node tile:  xvn = h + vn[batch]         (one-hot contraction, exact)
#                   pooled_partial = sum_b xvn  (for the virtual-node update)
#   per edge chunk: msg = relu(h[src] + vn[batch[src]] + edge_emb)
#                   agg += local_dst_onehot^T @ msg      (MXU scatter-add)
#   last chunk:     h_out = BN(mlp((1+eps)*xvn + agg)) (+ReLU)   [dropout = id]
# ---------------------------------------------------------------------------
def _gin_layer_kernel(ecnt_ref,                     # SMEM  [n_nt] int32  (scalar prefetch)
                      eps_ref,                      # SMEM  (1, 1) f32
                      h_ref,                        # VMEM  (TN, Dp) f32   node features
                      vn_ref,                       # VMEM  (Bp, Dp) f32   virtual-node emb
                      nbat_ref,                     # VMEM  (1, 8, TN) int32  graph id per node (-1 pad)
                      srcf_ref,                     # VMEM  (1, TE, Dp) f32  gathered h[src]
                      eidx_ref,                     # VMEM  (1, 1, 8, TE) int32 row0=local dst, row1=batch[src]
                      eemb_ref,                     # VMEM  (1, TE, Dp) f32  edge embeddings
                      w1_ref, s1_ref, t1_ref,       # (Dp,Dp), (1,Dp), (1,Dp)
                      w2_ref, s2_ref, t2_ref,
                      h_out_ref,                    # VMEM  (TN, Dp) f32
                      pool_ref,                     # VMEM  (1, Bp, Dp) f32  pooled partial
                      acc_ref, xvn_ref,             # VMEM scratch (TN, Dp) f32
                      *, apply_relu):
    i = pl.program_id(0)
    j = pl.program_id(1)
    n_ec = pl.num_programs(1)
    TN, Dp = h_ref.shape
    Bp = vn_ref.shape[0]
    TE = eemb_ref.shape[1]

    # ---- per node tile init (first edge chunk) ----------------------------
    @pl.when(j == 0)
    def _():
        acc_ref[...] = jnp.zeros_like(acc_ref)
        nbat = nbat_ref[0, 0:1, :]                                   # (1, TN)
        # transposed batch one-hot: b_oh_t[b, n] = (batch[n] == b)
        b_oh_t = _onehot(lax.broadcasted_iota(jnp.int32, (Bp, TN), 0) == nbat)
        # xvn = h + virtualnode_embedding[batch]   (transposed contraction)
        vn_per_node = lax.dot_general(
            b_oh_t, vn_ref[...].astype(MXU_DT),
            dimension_numbers=(((0,), (0,)), ((), ())),
            preferred_element_type=jnp.float32)                      # (TN, Dp)
        xvn = h_ref[...] + vn_per_node
        xvn_ref[...] = xvn
        # partial global_add_pool(xvn, batch) for this node tile
        pool_ref[0] = jnp.dot(b_oh_t, xvn.astype(MXU_DT),
                              preferred_element_type=jnp.float32)    # (Bp, Dp)

    # ---- message + scatter-add for this edge chunk -------------------------
    # (skip chunks that contain only padding edges for this node tile)
    @pl.when(j * TE < ecnt_ref[i])
    def _():
        dloc = eidx_ref[0, 0, 0:1, :]                                # (1, TE) local dst, -1 = pad
        sbat = eidx_ref[0, 0, 1:2, :]                                # (1, TE) batch[src], -1 = pad
        # vn[batch[src]] via one-hot contraction (exact)
        s_oh_t = _onehot(lax.broadcasted_iota(jnp.int32, (Bp, TE), 0) == sbat)
        vn_src = lax.dot_general(
            s_oh_t, vn_ref[...].astype(MXU_DT),
            dimension_numbers=(((0,), (0,)), ((), ())),
            preferred_element_type=jnp.float32)                      # (TE, Dp)
        msg = jnp.maximum(srcf_ref[0] + vn_src + eemb_ref[0], 0.0)   # (TE, Dp)
        # scatter-add into this node tile: local transposed one-hot on MXU
        d_oh_t = _onehot(lax.broadcasted_iota(jnp.int32, (TN, TE), 0) == dloc)
        acc_ref[...] += jnp.dot(d_oh_t, msg.astype(MXU_DT),
                                preferred_element_type=jnp.float32)

    # ---- finalize: GIN MLP + outer BatchNorm (+ ReLU) ----------------------
    @pl.when(j == n_ec - 1)
    def _():
        h0 = (1.0 + eps_ref[0, 0]) * xvn_ref[...] + acc_ref[...]
        h1 = jnp.dot(h0.astype(MXU_DT), w1_ref[...].astype(MXU_DT),
                     preferred_element_type=jnp.float32)
        h1 = jnp.maximum(h1 * s1_ref[...] + t1_ref[...], 0.0)        # Linear+BN folded, ReLU
        h2 = jnp.dot(h1.astype(MXU_DT), w2_ref[...].astype(MXU_DT),
                     preferred_element_type=jnp.float32)
        h2 = h2 * s2_ref[...] + t2_ref[...]                          # Linear + outer BN folded
        if apply_relu:
            h2 = jnp.maximum(h2, 0.0)
        h_out_ref[...] = h2                                          # dropout = identity (eval)


def gin_layer_pallas(h_pad, vn, srcf_b, eemb_b, graph, mlp, apply_relu):
    n_nt, n_ec, tn, te = graph['n_nt'], graph['n_ec'], graph['tn'], graph['te']
    N_pad, Dp = h_pad.shape
    Bp = vn.shape[0]

    kernel = functools.partial(_gin_layer_kernel, apply_relu=apply_relu)

    flops = int(2 * n_nt * n_ec * te * Dp * (tn + Bp)
                + 2 * n_nt * tn * Dp * (2 * Bp + 2 * Dp))
    bytes_accessed = int(4 * (2 * N_pad * Dp + 2 * n_nt * n_ec * te * Dp
                              + n_nt * Bp * Dp + Bp * Dp + 2 * Dp * Dp + 4 * Dp
                              + n_nt * SUBLANES * tn + n_nt * n_ec * SUBLANES * te))

    grid_spec = pltpu.PrefetchScalarGridSpec(
        num_scalar_prefetch=1,
        grid=(n_nt, n_ec),
        in_specs=[
            pl.BlockSpec(memory_space=pltpu.MemorySpace.SMEM),           # eps (1,1)
            pl.BlockSpec((tn, Dp), lambda i, j, ec: (i, 0)),             # h
            pl.BlockSpec((Bp, Dp), lambda i, j, ec: (0, 0)),             # vn
            pl.BlockSpec((1, SUBLANES, tn), lambda i, j, ec: (i, 0, 0)),  # node batch ids
            pl.BlockSpec((1, te, Dp), lambda i, j, ec: (i, j, 0)),       # gathered h[src]
            pl.BlockSpec((1, 1, SUBLANES, te), lambda i, j, ec: (i, j, 0, 0)),  # edge indices
            pl.BlockSpec((1, te, Dp), lambda i, j, ec: (i, j, 0)),       # edge embeddings
            pl.BlockSpec((Dp, Dp), lambda i, j, ec: (0, 0)),             # w1
            pl.BlockSpec((1, Dp), lambda i, j, ec: (0, 0)),              # s1
            pl.BlockSpec((1, Dp), lambda i, j, ec: (0, 0)),              # t1
            pl.BlockSpec((Dp, Dp), lambda i, j, ec: (0, 0)),             # w2
            pl.BlockSpec((1, Dp), lambda i, j, ec: (0, 0)),              # s2
            pl.BlockSpec((1, Dp), lambda i, j, ec: (0, 0)),              # t2
        ],
        out_specs=[
            pl.BlockSpec((tn, Dp), lambda i, j, ec: (i, 0)),             # h_out
            pl.BlockSpec((1, Bp, Dp), lambda i, j, ec: (i, 0, 0)),       # pooled partials
        ],
        scratch_shapes=[pltpu.VMEM((tn, Dp), jnp.float32),               # agg accumulator
                        pltpu.VMEM((tn, Dp), jnp.float32)],              # xvn tile
    )

    h_out, pool_part = pl.pallas_call(
        kernel,
        out_shape=(jax.ShapeDtypeStruct((N_pad, Dp), jnp.float32),
                   jax.ShapeDtypeStruct((n_nt, Bp, Dp), jnp.float32)),
        grid_spec=grid_spec,
        compiler_params=pltpu.CompilerParams(
            dimension_semantics=("parallel", "arbitrary"),
            vmem_limit_bytes=32 * 1024 * 1024),
        cost_estimate=pl.CostEstimate(flops=flops, transcendentals=0,
                                      bytes_accessed=bytes_accessed),
    )(graph['ecnt'], mlp['eps'], h_pad, vn, graph['nbat'], srcf_b,
      graph['eidx'], eemb_b,
      mlp['w1'], mlp['s1'], mlp['t1'], mlp['w2'], mlp['s2'], mlp['t2'])
    return h_out, pool_part


# ---------------------------------------------------------------------------
# Kernel 2: virtual-node update (tiny): reduce pooled partials + 2x(Linear,BN,ReLU)
# ---------------------------------------------------------------------------
def _vn_update_kernel(part_ref, vn_ref, w1_ref, s1_ref, t1_ref,
                      w2_ref, s2_ref, t2_ref, out_ref):
    pooled = jnp.sum(part_ref[...], axis=0) + vn_ref[...]
    t = jnp.dot(pooled.astype(MXU_DT), w1_ref[...].astype(MXU_DT),
                preferred_element_type=jnp.float32)
    t = jnp.maximum(t * s1_ref[...] + t1_ref[...], 0.0)
    t = jnp.dot(t.astype(MXU_DT), w2_ref[...].astype(MXU_DT),
                preferred_element_type=jnp.float32)
    out_ref[...] = jnp.maximum(t * s2_ref[...] + t2_ref[...], 0.0)   # dropout = identity


def vn_update_pallas(pool_part, vn, mlp):
    Bp, Dp = vn.shape
    vmem = pl.BlockSpec(memory_space=pltpu.MemorySpace.VMEM)
    return pl.pallas_call(
        _vn_update_kernel,
        out_shape=jax.ShapeDtypeStruct((Bp, Dp), jnp.float32),
        in_specs=[vmem] * 8,
        out_specs=vmem,
    )(pool_part, vn, mlp['w1'], mlp['s1'], mlp['t1'],
      mlp['w2'], mlp['s2'], mlp['t2'])


# ---------------------------------------------------------------------------
# Host-side graph preprocessing: sort edges by destination, bucket per
# destination node tile, pad each bucket to a multiple of the edge chunk.
# ---------------------------------------------------------------------------
def build_graph_blocks(edge_index, batch, num_nodes, num_graphs, tn, te):
    src = np.asarray(edge_index[0]).astype(np.int64)
    dst = np.asarray(edge_index[1]).astype(np.int64)
    bat = np.asarray(batch).astype(np.int64)
    N, E = int(num_nodes), int(src.shape[0])

    n_nt = max(1, -(-N // tn))
    N_pad = n_nt * tn
    Bp = _round_up(max(int(num_graphs), 1), SUBLANES)

    order = np.argsort(dst, kind='stable')
    src_s, dst_s = src[order], dst[order]
    counts = np.bincount(dst_s // tn, minlength=n_nt).astype(np.int64)
    ept = _round_up(max(int(counts.max()) if E > 0 else 1, 1), te)
    n_ec = ept // te

    src_b = np.zeros((n_nt, ept), np.int32)            # pad -> node 0 (masked by dloc = -1)
    sbat_b = np.full((n_nt, ept), -1, np.int32)
    dloc_b = np.full((n_nt, ept), -1, np.int32)
    eperm_b = np.full((n_nt, ept), E, np.int32)        # E -> extra all-zero embedding row
    starts = np.concatenate([[0], np.cumsum(counts)])
    for i in range(n_nt):
        c, s0 = int(counts[i]), int(starts[i])
        src_b[i, :c] = src_s[s0:s0 + c]
        sbat_b[i, :c] = bat[src_s[s0:s0 + c]]
        dloc_b[i, :c] = dst_s[s0:s0 + c] - i * tn
        eperm_b[i, :c] = order[s0:s0 + c]

    nb = np.full((N_pad,), -1, np.int32)
    nb[:N] = bat
    nbat = np.repeat(nb.reshape(n_nt, 1, tn), SUBLANES, axis=1)

    eidx = np.full((n_nt, n_ec, SUBLANES, te), -1, np.int32)
    eidx[:, :, 0, :] = dloc_b.reshape(n_nt, n_ec, te)
    eidx[:, :, 1, :] = sbat_b.reshape(n_nt, n_ec, te)

    return dict(n_nt=n_nt, n_ec=n_ec, tn=tn, te=te, ept=ept,
                N=N, N_pad=N_pad, E=E, B=int(num_graphs), Bp=Bp,
                ecnt=jnp.asarray(counts.astype(np.int32)),
                nbat=jnp.asarray(nbat),
                eidx=jnp.asarray(eidx),
                src_b=jnp.asarray(src_b),
                eperm_b=jnp.asarray(eperm_b))


# ---------------------------------------------------------------------------
# Parameters (deterministic, synthetic), eval-mode BN folded + biases folded.
# ---------------------------------------------------------------------------
def _fold_bn(gamma, beta, mean, var, eps=1e-5):
    scale = gamma / jnp.sqrt(var + eps)
    shift = beta - mean * scale
    return scale, shift


def _init_bn(key, d):
    k1, k2, k3, k4 = jax.random.split(key, 4)
    gamma = 1.0 + 0.1 * jax.random.normal(k1, (d,), jnp.float32)
    beta = 0.1 * jax.random.normal(k2, (d,), jnp.float32)
    mean = 0.1 * jax.random.normal(k3, (d,), jnp.float32)
    var = jax.random.uniform(k4, (d,), jnp.float32, 0.5, 1.5)
    return _fold_bn(gamma, beta, mean, var)


def _init_linear(key, d_in, d_out):
    k1, k2 = jax.random.split(key)
    w = 0.1 * jax.random.normal(k1, (d_in, d_out), jnp.float32)
    b = 0.1 * jax.random.normal(k2, (d_out,), jnp.float32)
    return w, b


def _linear_bn(klin, kbn, d):
    """(x @ w + b) * s_bn + t_bn == (x @ w) * s + t,  s = s_bn, t = b*s_bn + t_bn."""
    w, b = _init_linear(klin, d, d)
    s_bn, t_bn = _init_bn(kbn, d)
    return w, s_bn[None, :], (b * s_bn + t_bn)[None, :]


def init_params(key, num_layers, emb_dim,
                num_atom_feats=3, atom_vocab=10,
                num_bond_feats=3, bond_vocab=6):
    params = {'emb_dim': emb_dim, 'num_layers': num_layers}
    key, k = jax.random.split(key)
    params['atom_tables'] = [
        0.1 * jax.random.normal(kk, (atom_vocab, emb_dim), jnp.float32)
        for kk in jax.random.split(k, num_atom_feats)]

    convs, vn_mlps = [], []
    for _ in range(num_layers):
        key, k1, k2, k3, k4, k5 = jax.random.split(key, 6)
        p = {'bond_tables': [
            0.1 * jax.random.normal(kk, (bond_vocab, emb_dim), jnp.float32)
            for kk in jax.random.split(k1, num_bond_feats)]}
        p['eps'] = jnp.zeros((1, 1), jnp.float32)                 # torch init: eps = 0
        p['w1'], p['s1'], p['t1'] = _linear_bn(k2, k3, emb_dim)   # Linear -> inner BN
        p['w2'], p['s2'], p['t2'] = _linear_bn(k4, k5, emb_dim)   # Linear -> outer BN
        convs.append(p)

    for _ in range(num_layers - 1):
        key, k1, k2, k3, k4 = jax.random.split(key, 5)
        p = {}
        p['w1'], p['s1'], p['t1'] = _linear_bn(k1, k2, emb_dim)
        p['w2'], p['s2'], p['t2'] = _linear_bn(k3, k4, emb_dim)
        vn_mlps.append(p)

    params['convs'] = convs
    params['vn_mlps'] = vn_mlps
    return params


def _pad_w(w, D, Dp):
    return jnp.zeros((Dp, Dp), jnp.float32).at[:D, :D].set(w)


def _pad_v(v, D, Dp):
    return jnp.zeros((1, Dp), jnp.float32).at[:, :D].set(v)


def _pad_mlp(p, D, Dp, with_eps=False):
    out = {'w1': _pad_w(p['w1'], D, Dp), 's1': _pad_v(p['s1'], D, Dp),
           't1': _pad_v(p['t1'], D, Dp),
           'w2': _pad_w(p['w2'], D, Dp), 's2': _pad_v(p['s2'], D, Dp),
           't2': _pad_v(p['t2'], D, Dp)}
    if with_eps:
        out['eps'] = p['eps']
    return out


# ---------------------------------------------------------------------------
# Full forward passes
# ---------------------------------------------------------------------------
def gnn_node_virtualnode_forward_pallas(params, x_feat, edge_index, edge_attr,
                                        batch, num_graphs, *,
                                        node_tile=256, edge_tile=512):
    D = params['emb_dim']
    L = params['num_layers']
    N = int(x_feat.shape[0])
    E = int(edge_attr.shape[0])
    Dp = _round_up(D, LANES)                      # lane-dense feature dim

    tn = min(node_tile, _round_up(N, SUBLANES))
    te = min(edge_tile, _round_up(max(E, 1), SUBLANES))
    graph = build_graph_blocks(edge_index, batch, N, num_graphs, tn, te)
    N_pad, Bp = graph['N_pad'], graph['Bp']

    # atom encoder (embedding gather in XLA glue), zero-padded to lane width
    h = sum(params['atom_tables'][f][x_feat[:, f]] for f in range(x_feat.shape[1]))
    h_pad = jnp.zeros((N_pad, Dp), jnp.float32).at[:N, :D].set(h)

    # virtual-node embedding initialized to 0 (torch.nn.init.constant_)
    vn = jnp.zeros((Bp, Dp), jnp.float32)

    conv_p = [_pad_mlp(p, D, Dp, with_eps=True) for p in params['convs']]
    vn_p = [_pad_mlp(p, D, Dp) for p in params['vn_mlps']]

    for layer in range(L):
        cp = params['convs'][layer]
        # bond encoder + bucketing (pad edges map to an all-zero embedding row)
        eemb = sum(cp['bond_tables'][f][edge_attr[:, f]]
                   for f in range(edge_attr.shape[1]))
        eemb_pad = jnp.zeros((E + 1, Dp), jnp.float32).at[:E, :D].set(eemb)
        eemb_b = eemb_pad[graph['eperm_b']]                 # [n_nt, ept, Dp]
        # per-edge source features h[src] (row gather in XLA glue)
        srcf_b = h_pad[graph['src_b']]                      # [n_nt, ept, Dp]

        h_pad, pool_part = gin_layer_pallas(
            h_pad, vn, srcf_b, eemb_b, graph, conv_p[layer],
            apply_relu=(layer != L - 1))

        if layer < L - 1:
            vn = vn_update_pallas(pool_part, vn, vn_p[layer])

    # JK = 'last'; strip node / lane padding
    return h_pad[:N, :D]


def _rq(a):
    return a.astype(jnp.bfloat16).astype(jnp.float32)


def _mm(a, b):
    return jnp.dot(a.astype(jnp.bfloat16), b.astype(jnp.bfloat16),
                   preferred_element_type=jnp.float32)


def forward_reference(params, x_feat, edge_index, edge_attr, batch, num_graphs):
    """Pure-JAX reference with the same bf16-at-MXU-input rounding points."""
    src, dst = edge_index[0], edge_index[1]
    D, L = params['emb_dim'], params['num_layers']
    N = x_feat.shape[0]
    h = sum(params['atom_tables'][f][x_feat[:, f]] for f in range(x_feat.shape[1]))
    vn = jnp.zeros((num_graphs, D), jnp.float32)
    for layer in range(L):
        cp = params['convs'][layer]
        eemb = sum(cp['bond_tables'][f][edge_attr[:, f]]
                   for f in range(edge_attr.shape[1]))
        vnq = _rq(vn)
        xvn = h + vnq[batch]
        msg = jnp.maximum(xvn[src] + eemb, 0.0)
        agg = jnp.zeros((N, D), jnp.float32).at[dst].add(_rq(msg))
        h0 = (1.0 + cp['eps'][0, 0]) * xvn + agg
        h1 = jnp.maximum(_mm(h0, cp['w1']) * cp['s1'] + cp['t1'], 0.0)
        h2 = _mm(h1, cp['w2']) * cp['s2'] + cp['t2']
        if layer != L - 1:
            h2 = jnp.maximum(h2, 0.0)
        if layer < L - 1:
            vp = params['vn_mlps'][layer]
            pooled = jnp.zeros((num_graphs, D), jnp.float32).at[batch].add(_rq(xvn)) + vn
            t = jnp.maximum(_mm(pooled, vp['w1']) * vp['s1'] + vp['t1'], 0.0)
            vn = jnp.maximum(_mm(t, vp['w2']) * vp['s2'] + vp['t2'], 0.0)
        h = h2
    return h


# ---------------------------------------------------------------------------
if __name__ == "__main__":
    num_layers = 3
    emb_dim = 32
    num_graphs = 2
    nodes_per_graph = 8
    edges_per_graph = 12
    N = num_graphs * nodes_per_graph
    E = num_graphs * edges_per_graph

    key = jax.random.PRNGKey(0)
    key, kx, ke, kp, *kedges = jax.random.split(key, 4 + 2 * num_graphs)

    x_feat = jax.random.randint(kx, (N, 3), 0, 10)       # atom categorical features
    edge_attr = jax.random.randint(ke, (E, 3), 0, 6)     # bond categorical features

    srcs, dsts = [], []
    for g in range(num_graphs):
        lo, hi = g * nodes_per_graph, (g + 1) * nodes_per_graph
        srcs.append(jax.random.randint(kedges[2 * g], (edges_per_graph,), lo, hi))
        dsts.append(jax.random.randint(kedges[2 * g + 1], (edges_per_graph,), lo, hi))
    edge_index = jnp.stack([jnp.concatenate(srcs), jnp.concatenate(dsts)])  # [2, E]
    batch = jnp.repeat(jnp.arange(num_graphs), nodes_per_graph)             # [N]

    params = init_params(kp, num_layers, emb_dim)

    # Small tiles so the demo exercises multiple node tiles and edge chunks
    # (defaults are node_tile=256 / edge_tile=512 for realistic graphs).
    out = gnn_node_virtualnode_forward_pallas(
        params, x_feat, edge_index, edge_attr, batch, num_graphs,
        node_tile=8, edge_tile=8)
    out = jax.block_until_ready(out)

    ref = forward_reference(params, x_feat, edge_index, edge_attr, batch, num_graphs)
    ref = jax.block_until_ready(ref)

    np.testing.assert_allclose(np.asarray(out), np.asarray(ref), rtol=2e-3, atol=2e-3)
    assert out.shape == (N, emb_dim)
    print("KERNEL_OK")
</pallas_src>

<mosaic_0001>
module attributes {stable_mosaic.version = 11 : i64} {
  func.func @_gin_layer_kernel(%arg0: i32, %arg1: i32, %arg2: memref<2xi32, #tpu.memory_space<smem>>, %arg3: memref<1x1xf32, #tpu.memory_space<smem>>, %arg4: memref<8x128xf32, #tpu.memory_space<vmem>>, %arg5: memref<8x128xf32, #tpu.memory_space<vmem>>, %arg6: memref<1x8x8xi32, #tpu.memory_space<vmem>>, %arg7: memref<1x8x128xf32, #tpu.memory_space<vmem>>, %arg8: memref<1x1x8x8xi32, #tpu.memory_space<vmem>>, %arg9: memref<1x8x128xf32, #tpu.memory_space<vmem>>, %arg10: memref<128x128xf32, #tpu.memory_space<vmem>>, %arg11: memref<1x128xf32, #tpu.memory_space<vmem>>, %arg12: memref<1x128xf32, #tpu.memory_space<vmem>>, %arg13: memref<128x128xf32, #tpu.memory_space<vmem>>, %arg14: memref<1x128xf32, #tpu.memory_space<vmem>>, %arg15: memref<1x128xf32, #tpu.memory_space<vmem>>, %arg16: memref<8x128xf32, #tpu.memory_space<vmem>>, %arg17: memref<1x8x128xf32, #tpu.memory_space<vmem>>, %arg18: memref<8x128xf32, #tpu.memory_space<vmem>>, %arg19: memref<8x128xf32, #tpu.memory_space<vmem>>) attributes {dimension_semantics = [#tpu.dimension_semantics<parallel>, #tpu.dimension_semantics<arbitrary>], iteration_bounds = array<i64: 2, 2>, scalar_prefetch = 1 : i64, scratch_operands = 2 : i64, tpu.core_type = #tpu.core_type<tc>, window_params = [{transform_indices = @transform_0, window_bounds = array<i64: 1, 1>}, {transform_indices = @transform_1, window_bounds = array<i64: 8, 128>}, {pipeline_mode = #tpu.pipeline_mode<synchronous>, transform_indices = @transform_2, window_bounds = array<i64: 8, 128>}, {transform_indices = @transform_3, window_bounds = array<i64: 1, 8, 8>}, {transform_indices = @transform_4, window_bounds = array<i64: 1, 8, 128>}, {transform_indices = @transform_5, window_bounds = array<i64: 1, 1, 8, 8>}, {transform_indices = @transform_6, window_bounds = array<i64: 1, 8, 128>}, {pipeline_mode = #tpu.pipeline_mode<synchronous>, transform_indices = @transform_7, window_bounds = array<i64: 128, 128>}, {pipeline_mode = #tpu.pipeline_mode<synchronous>, transform_indices = @transform_8, window_bounds = array<i64: 1, 128>}, {pipeline_mode = #tpu.pipeline_mode<synchronous>, transform_indices = @transform_9, window_bounds = array<i64: 1, 128>}, {pipeline_mode = #tpu.pipeline_mode<synchronous>, transform_indices = @transform_10, window_bounds = array<i64: 128, 128>}, {pipeline_mode = #tpu.pipeline_mode<synchronous>, transform_indices = @transform_11, window_bounds = array<i64: 1, 128>}, {pipeline_mode = #tpu.pipeline_mode<synchronous>, transform_indices = @transform_12, window_bounds = array<i64: 1, 128>}, {transform_indices = @transform_13, window_bounds = array<i64: 8, 128>}, {transform_indices = @transform_14, window_bounds = array<i64: 1, 8, 128>}]} {
    %c0_i32 = arith.constant 0 : i32
    %0 = arith.cmpi eq, %arg1, %c0_i32 : i32
    %1 = arith.extui %0 : i1 to i32
    %c0_i32_0 = arith.constant 0 : i32
    %2 = arith.cmpi ne, %1, %c0_i32_0 : i32
    scf.if %2 {
      %cst = arith.constant 0.000000e+00 : f32
      %12 = vector.broadcast %cst : f32 to vector<8x128xf32>
      %c0 = arith.constant 0 : index
      %c0_3 = arith.constant 0 : index
      %13 = vector.load %arg18[%c0, %c0_3] : memref<8x128xf32, #tpu.memory_space<vmem>>, vector<8x128xf32>
      tpu.vector_store %arg18[%c0, %c0_3], %12 {strides = array<i32>} : memref<8x128xf32, #tpu.memory_space<vmem>>, vector<8x128xf32>,
      %c0_4 = arith.constant 0 : index
      %c0_5 = arith.constant 0 : index
      %c0_6 = arith.constant 0 : index
      %14 = vector.load %arg6[%c0_4, %c0_5, %c0_6] : memref<1x8x8xi32, #tpu.memory_space<vmem>>, vector<1x1x8xi32>
      %15 = vector.shape_cast %14 : vector<1x1x8xi32> to vector<1x8xi32>
      %16 = tpu.iota {dimensions = array<i32: 0>} : vector<8x8xi32>
      %17 = vector.broadcast %15 : vector<1x8xi32> to vector<8x8xi32>
      %18 = arith.cmpi eq, %16, %17 : vector<8x8xi32>
      %cst_7 = arith.constant 1.000000e+00 : f32
      %cst_8 = arith.constant 0.000000e+00 : f32
      %19 = vector.broadcast %cst_7 : f32 to vector<8x8xf32>
      %20 = vector.broadcast %cst_8 : f32 to vector<8x8xf32>
      %21 = arith.select %18, %19, %20 : vector<8x8xi1>, vector<8x8xf32>
      %22 = arith.truncf %21 : vector<8x8xf32> to vector<8x8xbf16>
      %c0_9 = arith.constant 0 : index
      %c0_10 = arith.constant 0 : index
      %23 = vector.load %arg5[%c0_9, %c0_10] : memref<8x128xf32, #tpu.memory_space<vmem>>, vector<8x128xf32>
      %24 = arith.truncf %23 : vector<8x128xf32> to vector<8x128xbf16>
      %cst_11 = arith.constant dense<0.000000e+00> : vector<8x128xf32>
      %25 = tpu.matmul %22, %24, %cst_11 {dimension_numbers = #tpu.dot_dimension_numbers<[0], [0], [1], [1], [0, 1, 1, 1], [], []>} : vector<8x8xbf16>, vector<8x128xbf16>, vector<8x128xf32> -> vector<8x128xf32>
      %c0_12 = arith.constant 0 : index
      %c0_13 = arith.constant 0 : index
      %26 = vector.load %arg4[%c0_12, %c0_13] : memref<8x128xf32, #tpu.memory_space<vmem>>, vector<8x128xf32>
      %27 = arith.addf %26, %25 : vector<8x128xf32>
      %c0_14 = arith.constant 0 : index
      %c0_15 = arith.constant 0 : index
      %28 = vector.load %arg19[%c0_14, %c0_15] : memref<8x128xf32, #tpu.memory_space<vmem>>, vector<8x128xf32>
      tpu.vector_store %arg19[%c0_14, %c0_15], %27 {strides = array<i32>} : memref<8x128xf32, #tpu.memory_space<vmem>>, vector<8x128xf32>,
      %29 = arith.truncf %27 : vector<8x128xf32> to vector<8x128xbf16>
      %cst_16 = arith.constant dense<0.000000e+00> : vector<8x128xf32>
      %30 = tpu.matmul %22, %29, %cst_16 {dimension_numbers = #tpu.dot_dimension_numbers<[1], [0], [0], [1], [0, 0, 1, 1], [], []>} : vector<8x8xbf16>, vector<8x128xbf16>, vector<8x128xf32> -> vector<8x128xf32>
      %c0_17 = arith.constant 0 : index
      %c0_18 = arith.constant 0 : index
      %c0_19 = arith.constant 0 : index
      %31 = vector.load %arg17[%c0_17, %c0_18, %c0_19] : memref<1x8x128xf32, #tpu.memory_space<vmem>>, vector<1x8x128xf32>
      %32 = vector.shape_cast %31 : vector<1x8x128xf32> to vector<8x128xf32>
      %33 = vector.shape_cast %30 : vector<8x128xf32> to vector<1x8x128xf32>
      tpu.vector_store %arg17[%c0_17, %c0_18, %c0_19], %33 {strides = array<i32>} : memref<1x8x128xf32, #tpu.memory_space<vmem>>, vector<1x8x128xf32>,
    } else {
    }
    %c8_i32 = arith.constant 8 : i32
    %3 = arith.muli %arg1, %c8_i32 : i32
    %4 = arith.index_cast %arg0 : i32 to index
    %5 = memref.load %arg2[%4] : memref<2xi32, #tpu.memory_space<smem>>
    %6 = arith.cmpi slt, %3, %5 : i32
    %7 = arith.extui %6 : i1 to i32
    %c0_i32_1 = arith.constant 0 : i32
    %8 = arith.cmpi ne, %7, %c0_i32_1 : i32
    scf.if %8 {
      %c0 = arith.constant 0 : index
      %c0_3 = arith.constant 0 : index
      %c0_4 = arith.constant 0 : index
      %c0_5 = arith.constant 0 : index
      %12 = vector.load %arg8[%c0, %c0_3, %c0_4, %c0_5] : memref<1x1x8x8xi32, #tpu.memory_space<vmem>>, vector<1x1x1x8xi32>
      %13 = vector.shape_cast %12 : vector<1x1x1x8xi32> to vector<1x8xi32>
      %c0_6 = arith.constant 0 : index
      %c0_7 = arith.constant 0 : index
      %c1 = arith.constant 1 : index
      %c0_8 = arith.constant 0 : index
      %14 = vector.load %arg8[%c0_6, %c0_7, %c1, %c0_8] : memref<1x1x8x8xi32, #tpu.memory_space<vmem>>, vector<1x1x1x8xi32>
      %15 = vector.shape_cast %14 : vector<1x1x1x8xi32> to vector<1x8xi32>
      %16 = tpu.iota {dimensions = array<i32: 0>} : vector<8x8xi32>
      %17 = vector.broadcast %15 : vector<1x8xi32> to vector<8x8xi32>
      %18 = arith.cmpi eq, %16, %17 : vector<8x8xi32>
      %cst = arith.constant 1.000000e+00 : f32
      %cst_9 = arith.constant 0.000000e+00 : f32
      %19 = vector.broadcast %cst : f32 to vector<8x8xf32>
      %20 = vector.broadcast %cst_9 : f32 to vector<8x8xf32>
      %21 = arith.select %18, %19, %20 : vector<8x8xi1>, vector<8x8xf32>
      %22 = arith.truncf %21 : vector<8x8xf32> to vector<8x8xbf16>
      %c0_10 = arith.constant 0 : index
      %c0_11 = arith.constant 0 : index
      %23 = vector.load %arg5[%c0_10, %c0_11] : memref<8x128xf32, #tpu.memory_space<vmem>>, vector<8x128xf32>
      %24 = arith.truncf %23 : vector<8x128xf32> to vector<8x128xbf16>
      %cst_12 = arith.constant dense<0.000000e+00> : vector<8x128xf32>
      %25 = tpu.matmul %22, %24, %cst_12 {dimension_numbers = #tpu.dot_dimension_numbers<[0], [0], [1], [1], [0, 1, 1, 1], [], []>} : vector<8x8xbf16>, vector<8x128xbf16>, vector<8x128xf32> -> vector<8x128xf32>
      %c0_13 = arith.constant 0 : index
      %c0_14 = arith.constant 0 : index
      %c0_15 = arith.constant 0 : index
      %26 = vector.load %arg7[%c0_13, %c0_14, %c0_15] : memref<1x8x128xf32, #tpu.memory_space<vmem>>, vector<1x8x128xf32>
      %27 = vector.shape_cast %26 : vector<1x8x128xf32> to vector<8x128xf32>
      %28 = arith.addf %27, %25 : vector<8x128xf32>
      %c0_16 = arith.constant 0 : index
      %c0_17 = arith.constant 0 : index
      %c0_18 = arith.constant 0 : index
      %29 = vector.load %arg9[%c0_16, %c0_17, %c0_18] : memref<1x8x128xf32, #tpu.memory_space<vmem>>, vector<1x8x128xf32>
      %30 = vector.shape_cast %29 : vector<1x8x128xf32> to vector<8x128xf32>
      %31 = arith.addf %28, %30 : vector<8x128xf32>
      %cst_19 = arith.constant 0.000000e+00 : f32
      %32 = vector.broadcast %cst_19 : f32 to vector<8x128xf32>
      %33 = arith.maximumf %31, %32 : vector<8x128xf32>
      %34 = tpu.iota {dimensions = array<i32: 0>} : vector<8x8xi32>
      %35 = vector.broadcast %13 : vector<1x8xi32> to vector<8x8xi32>
      %36 = arith.cmpi eq, %34, %35 : vector<8x8xi32>
      %cst_20 = arith.constant 1.000000e+00 : f32
      %cst_21 = arith.constant 0.000000e+00 : f32
      %37 = vector.broadcast %cst_20 : f32 to vector<8x8xf32>
      %38 = vector.broadcast %cst_21 : f32 to vector<8x8xf32>
      %39 = arith.select %36, %37, %38 : vector<8x8xi1>, vector<8x8xf32>
      %40 = arith.truncf %39 : vector<8x8xf32> to vector<8x8xbf16>
      %c0_22 = arith.constant 0 : index
      %c0_23 = arith.constant 0 : index
      %41 = vector.load %arg18[%c0_22, %c0_23] : memref<8x128xf32, #tpu.memory_space<vmem>>, vector<8x128xf32>
      %42 = arith.truncf %33 : vector<8x128xf32> to vector<8x128xbf16>
      %cst_24 = arith.constant dense<0.000000e+00> : vector<8x128xf32>
      %43 = tpu.matmul %40, %42, %cst_24 {dimension_numbers = #tpu.dot_dimension_numbers<[1], [0], [0], [1], [0, 0, 1, 1], [], []>} : vector<8x8xbf16>, vector<8x128xbf16>, vector<8x128xf32> -> vector<8x128xf32>
      %44 = arith.addf %41, %43 : vector<8x128xf32>
      %c0_25 = arith.constant 0 : index
      %c0_26 = arith.constant 0 : index
      %45 = vector.load %arg18[%c0_25, %c0_26] : memref<8x128xf32, #tpu.memory_space<vmem>>, vector<8x128xf32>
      tpu.vector_store %arg18[%c0_25, %c0_26], %44 {strides = array<i32>} : memref<8x128xf32, #tpu.memory_space<vmem>>, vector<8x128xf32>,
    } else {
    }
    %c1_i32 = arith.constant 1 : i32
    %9 = arith.cmpi eq, %arg1, %c1_i32 : i32
    %10 = arith.extui %9 : i1 to i32
    %c0_i32_2 = arith.constant 0 : i32
    %11 = arith.cmpi ne, %10, %c0_i32_2 : i32
    scf.if %11 {
      %c0 = arith.constant 0 : index
      %c0_3 = arith.constant 0 : index
      %12 = memref.load %arg3[%c0, %c0_3] : memref<1x1xf32, #tpu.memory_space<smem>>
      %cst = arith.constant 1.000000e+00 : f32
      %13 = arith.addf %cst, %12 : f32
      %c0_4 = arith.constant 0 : index
      %c0_5 = arith.constant 0 : index
      %14 = vector.load %arg19[%c0_4, %c0_5] : memref<8x128xf32, #tpu.memory_space<vmem>>, vector<8x128xf32>
      %15 = vector.broadcast %13 : f32 to vector<8x128xf32>
      %16 = arith.mulf %15, %14 : vector<8x128xf32>
      %c0_6 = arith.constant 0 : index
      %c0_7 = arith.constant 0 : index
      %17 = vector.load %arg18[%c0_6, %c0_7] : memref<8x128xf32, #tpu.memory_space<vmem>>, vector<8x128xf32>
      %18 = arith.addf %16, %17 : vector<8x128xf32>
      %19 = arith.truncf %18 : vector<8x128xf32> to vector<8x128xbf16>
      %c0_8 = arith.constant 0 : index
      %c0_9 = arith.constant 0 : index
      %20 = vector.load %arg10[%c0_8, %c0_9] : memref<128x128xf32, #tpu.memory_space<vmem>>, vector<128x128xf32>
      %21 = arith.truncf %20 : vector<128x128xf32> to vector<128x128xbf16>
      %cst_10 = arith.constant dense<0.000000e+00> : vector<8x128xf32>
      %22 = tpu.matmul %19, %21, %cst_10 {dimension_numbers = #tpu.dot_dimension_numbers<[1], [0], [0], [1], [0, 0, 1, 1], [], []>} : vector<8x128xbf16>, vector<128x128xbf16>, vector<8x128xf32> -> vector<8x128xf32>
      %c0_11 = arith.constant 0 : index
      %c0_12 = arith.constant 0 : index
      %23 = vector.load %arg11[%c0_11, %c0_12] : memref<1x128xf32, #tpu.memory_space<vmem>>, vector<1x128xf32>
      %24 = vector.broadcast %23 : vector<1x128xf32> to vector<8x128xf32>
      %25 = arith.mulf %22, %24 : vector<8x128xf32>
      %c0_13 = arith.constant 0 : index
      %c0_14 = arith.constant 0 : index
      %26 = vector.load %arg12[%c0_13, %c0_14] : memref<1x128xf32, #tpu.memory_space<vmem>>, vector<1x128xf32>
      %27 = vector.broadcast %26 : vector<1x128xf32> to vector<8x128xf32>
      %28 = arith.addf %25, %27 : vector<8x128xf32>
      %cst_15 = arith.constant 0.000000e+00 : f32
      %29 = vector.broadcast %cst_15 : f32 to vector<8x128xf32>
      %30 = arith.maximumf %28, %29 : vector<8x128xf32>
      %31 = arith.truncf %30 : vector<8x128xf32> to vector<8x128xbf16>
      %c0_16 = arith.constant 0 : index
      %c0_17 = arith.constant 0 : index
      %32 = vector.load %arg13[%c0_16, %c0_17] : memref<128x128xf32, #tpu.memory_space<vmem>>, vector<128x128xf32>
      %33 = arith.truncf %32 : vector<128x128xf32> to vector<128x128xbf16>
      %cst_18 = arith.constant dense<0.000000e+00> : vector<8x128xf32>
      %34 = tpu.matmul %31, %33, %cst_18 {dimension_numbers = #tpu.dot_dimension_numbers<[1], [0], [0], [1], [0, 0, 1, 1], [], []>} : vector<8x128xbf16>, vector<128x128xbf16>, vector<8x128xf32> -> vector<8x128xf32>
      %c0_19 = arith.constant 0 : index
      %c0_20 = arith.constant 0 : index
      %35 = vector.load %arg14[%c0_19, %c0_20] : memref<1x128xf32, #tpu.memory_space<vmem>>, vector<1x128xf32>
      %36 = vector.broadcast %35 : vector<1x128xf32> to vector<8x128xf32>
      %37 = arith.mulf %34, %36 : vector<8x128xf32>
      %c0_21 = arith.constant 0 : index
      %c0_22 = arith.constant 0 : index
      %38 = vector.load %arg15[%c0_21, %c0_22] : memref<1x128xf32, #tpu.memory_space<vmem>>, vector<1x128xf32>
      %39 = vector.broadcast %38 : vector<1x128xf32> to vector<8x128xf32>
      %40 = arith.addf %37, %39 : vector<8x128xf32>
      %cst_23 = arith.constant 0.000000e+00 : f32
      %41 = vector.broadcast %cst_23 : f32 to vector<8x128xf32>
      %42 = arith.maximumf %40, %41 : vector<8x128xf32>
      %c0_24 = arith.constant 0 : index
      %c0_25 = arith.constant 0 : index
      %43 = vector.load %arg16[%c0_24, %c0_25] : memref<8x128xf32, #tpu.memory_space<vmem>>, vector<8x128xf32>
      tpu.vector_store %arg16[%c0_24, %c0_25], %42 {strides = array<i32>} : memref<8x128xf32, #tpu.memory_space<vmem>>, vector<8x128xf32>,
    } else {
    }
    return
  }
  func.func @transform_0(%arg0: i32, %arg1: i32, %arg2: memref<2xi32, #tpu.memory_space<smem>>) -> (i32, i32) {
    %c0_i32 = arith.constant 0 : i32
    %c0_i32_0 = arith.constant 0 : i32
    %c0_i32_1 = arith.constant 0 : i32
    return %c0_i32, %c0_i32_0 : i32, i32
  }
  func.func @transform_1(%arg0: i32, %arg1: i32, %arg2: memref<2xi32, #tpu.memory_space<smem>>) -> (i32, i32) {
    %c0_i32 = arith.constant 0 : i32
    %c0_i32_0 = arith.constant 0 : i32
    return %arg0, %c0_i32 : i32, i32
  }
  func.func @transform_2(%arg0: i32, %arg1: i32, %arg2: memref<2xi32, #tpu.memory_space<smem>>) -> (i32, i32) {
    %c0_i32 = arith.constant 0 : i32
    %c0_i32_0 = arith.constant 0 : i32
    %c0_i32_1 = arith.constant 0 : i32
    return %c0_i32, %c0_i32_0 : i32, i32
  }
  func.func @transform_3(%arg0: i32, %arg1: i32, %arg2: memref<2xi32, #tpu.memory_space<smem>>) -> (i32, i32, i32) {
    %c0_i32 = arith.constant 0 : i32
    %c0_i32_0 = arith.constant 0 : i32
    %c0_i32_1 = arith.constant 0 : i32
    return %arg0, %c0_i32, %c0_i32_0 : i32, i32, i32
  }
  func.func @transform_4(%arg0: i32, %arg1: i32, %arg2: memref<2xi32, #tpu.memory_space<smem>>) -> (i32, i32, i32) {
    %c0_i32 = arith.constant 0 : i32
    %c0_i32_0 = arith.constant 0 : i32
    return %arg0, %arg1, %c0_i32 : i32, i32, i32
  }
  func.func @transform_5(%arg0: i32, %arg1: i32, %arg2: memref<2xi32, #tpu.memory_space<smem>>) -> (i32, i32, i32, i32) {
    %c0_i32 = arith.constant 0 : i32
    %c0_i32_0 = arith.constant 0 : i32
    %c0_i32_1 = arith.constant 0 : i32
    return %arg0, %arg1, %c0_i32, %c0_i32_0 : i32, i32, i32, i32
  }
  func.func @transform_6(%arg0: i32, %arg1: i32, %arg2: memref<2xi32, #tpu.memory_space<smem>>) -> (i32, i32, i32) {
    %c0_i32 = arith.constant 0 : i32
    %c0_i32_0 = arith.constant 0 : i32
    return %arg0, %arg1, %c0_i32 : i32, i32, i32
  }
  func.func @transform_7(%arg0: i32, %arg1: i32, %arg2: memref<2xi32, #tpu.memory_space<smem>>) -> (i32, i32) {
    %c0_i32 = arith.constant 0 : i32
    %c0_i32_0 = arith.constant 0 : i32
    %c0_i32_1 = arith.constant 0 : i32
    return %c0_i32, %c0_i32_0 : i32, i32
  }
  func.func @transform_8(%arg0: i32, %arg1: i32, %arg2: memref<2xi32, #tpu.memory_space<smem>>) -> (i32, i32) {
    %c0_i32 = arith.constant 0 : i32
    %c0_i32_0 = arith.constant 0 : i32
    %c0_i32_1 = arith.constant 0 : i32
    return %c0_i32, %c0_i32_0 : i32, i32
  }
  func.func @transform_9(%arg0: i32, %arg1: i32, %arg2: memref<2xi32, #tpu.memory_space<smem>>) -> (i32, i32) {
    %c0_i32 = arith.constant 0 : i32
    %c0_i32_0 = arith.constant 0 : i32
    %c0_i32_1 = arith.constant 0 : i32
    return %c0_i32, %c0_i32_0 : i32, i32
  }
  func.func @transform_10(%arg0: i32, %arg1: i32, %arg2: memref<2xi32, #tpu.memory_space<smem>>) -> (i32, i32) {
    %c0_i32 = arith.constant 0 : i32
    %c0_i32_0 = arith.constant 0 : i32
    %c0_i32_1 = arith.constant 0 : i32
    return %c0_i32, %c0_i32_0 : i32, i32
  }
  func.func @transform_11(%arg0: i32, %arg1: i32, %arg2: memref<2xi32, #tpu.memory_space<smem>>) -> (i32, i32) {
    %c0_i32 = arith.constant 0 : i32
    %c0_i32_0 = arith.constant 0 : i32
    %c0_i32_1 = arith.constant 0 : i32
    return %c0_i32, %c0_i32_0 : i32, i32
  }
  func.func @transform_12(%arg0: i32, %arg1: i32, %arg2: memref<2xi32, #tpu.memory_space<smem>>) -> (i32, i32) {
    %c0_i32 = arith.constant 0 : i32
    %c0_i32_0 = arith.constant 0 : i32
    %c0_i32_1 = arith.constant 0 : i32
    return %c0_i32, %c0_i32_0 : i32, i32
  }
  func.func @transform_13(%arg0: i32, %arg1: i32, %arg2: memref<2xi32, #tpu.memory_space<smem>>) -> (i32, i32) {
    %c0_i32 = arith.constant 0 : i32
    %c0_i32_0 = arith.constant 0 : i32
    return %arg0, %c0_i32 : i32, i32
  }
  func.func @transform_14(%arg0: i32, %arg1: i32, %arg2: memref<2xi32, #tpu.memory_space<smem>>) -> (i32, i32, i32) {
    %c0_i32 = arith.constant 0 : i32
    %c0_i32_0 = arith.constant 0 : i32
    %c0_i32_1 = arith.constant 0 : i32
    return %arg0, %c0_i32, %c0_i32_0 : i32, i32, i32
  }
}

</mosaic_0001>

<bundles_post_ra>
// kernel: tpu_custom_call.1
= control target key start
LH: loop header
LB: loop body
LE: loop exit
PB: predicated region body
PF: predicated region fallthrough
CT: control target
= control target key end

     0   :  { %s2778_s0 = inlined_call_operand.vmem [shape: s32[2], index: 0, kind: input, shape index: {}]   ;;  %s2779_s1 = inlined_call_operand.<no memory space> [shape: f32[1,1], index: 1, kind: input, shape index: {}]   ;;  %s2780_s2 = inlined_call_operand.hbm [shape: f32[16,128], index: 2, kind: input, shape index: {}]   ;;  %s2781_s3 = inlined_call_operand.vmem [shape: f32[8,128], index: 3, kind: input, shape index: {}]   ;;  %s2782_s4 = inlined_call_operand.hbm [shape: s32[2,8,8], index: 4, kind: input, shape index: {}]   ;;  %s2783_s5 = inlined_call_operand.hbm [shape: f32[2,16,128], index: 5, kind: input, shape index: {}]   ;;  %s2784_s6 = inlined_call_operand.hbm [shape: s32[2,2,8,8], index: 6, kind: input, shape index: {}]   ;;  %s2785_s7 = inlined_call_operand.hbm [shape: f32[2,16,128], index: 7, kind: input, shape index: {}]   ;;  %s2786_s8 = inlined_call_operand.hbm [shape: f32[128,128], index: 8, kind: input, shape index: {}]   ;;  %s2787_s9 = inlined_call_operand.vmem [shape: f32[1,128], index: 9, kind: input, shape index: {}]   ;;  %s2788_s10 = inlined_call_operand.vmem [shape: f32[1,128], index: 10, kind: input, shape index: {}]   ;;  %s2789_s11 = inlined_call_operand.hbm [shape: f32[128,128], index: 11, kind: input, shape index: {}]   ;;  %s2790_s12 = inlined_call_operand.vmem [shape: f32[1,128], index: 12, kind: input, shape index: {}]   ;;  %s2791_s13 = inlined_call_operand.vmem [shape: f32[1,128], index: 13, kind: input, shape index: {}]   ;;  %s2792_s14 = inlined_call_operand.hbm [shape: f32[16,128], index: 14, kind: output, shape index: {0}]   ;;  %s2793_s15 = inlined_call_operand.hbm [shape: f32[2,8,128], index: 15, kind: output, shape index: {1}]  }
   0x1   :  { %2831 = sst [smem:[#allocation43_spill]] %s2780_s2  ;;  %s21_s20 = sshll.u32 %s2778_s0, 4  ;;  %s22_s20 = int_to_ptr.vmem [resolvable:$true] %s21_s20 }
   0x2   :  { %2832 = sst [smem:[#allocation44_spill]] %s2781_s3  ;;  %s1706_s23 = scalar_lea.vmem %s22_s20, 16 }
   0x3   :  { %2833 = sst [smem:[#allocation45_spill]] %s2782_s4  ;;  %p1707_p0 = scmp.ne.s32.totalorder %s22_s20, %s1706_s23 }
   0x4   :  { %2834 = sst [smem:[#allocation46_spill]] %s2784_s6  ;;  %p1711_p1 = scmp.lt.s32.totalorder %s22_s20, %s22_s20 }
   0x5   :  { %2835 = sst [smem:[#allocation47_spill]] %s2786_s8  ;;  %p1712_p2 = scmp.lt.s32.totalorder %s1706_s23, %s1706_s23 }
   0x6   :  { %2836 = sst [smem:[#allocation48_spill]] %s2787_s9 }
   0x7   :  { %2837 = sst [smem:[#allocation49_spill]] %s2788_s10  ;;  %p1713_p3 = por %p1712_p2, %p1711_p1 }
   0x8   :  { %2838 = sst [smem:[#allocation50_spill]] %s2790_s12 }
   0x9   :  { %2839 = sst [smem:[#allocation51_spill]] %s2791_s13  ;;  %p1714_p4 = pnand %p1713_p3, %p1707_p0 }
   0xa   :  { %2840 = sst [smem:[#allocation52_spill]] %s2792_s14 }
   0xb   :  { %2841 = sst [smem:[#allocation53_spill]] %s2793_s15 }
   0xc   :  { %25 = sst [smem:[#allocation6]] %s2779_s1 }
   0xd   :  { %1717 = shalt.err (!%p1714_p4)  }
   0xe   :  { %s2098_s24 = smov [#allocation5]  }
   0xf   :  { %24 = dma.vmem_to_smem %s22_s20, 16, %s2098_s24, [#allocation4] }
  0x10   :  { %2024 = dma.done.wait [#allocation4], 16 }
  0x11   :  { %2025 = vsyncadd [#allocation4], 4294967280 }
  0x12   :  { %27 = sfence }
  0x13   :  { %28 = vsyncpa [#allocation8], 0 }
  0x14   :  { %30 = vsyncpa [#allocation8 + $0x1], 0 }
  0x15   :  { %31 = vsyncpa [#allocation11], 0 }
  0x16   :  { %33 = vsyncpa [#allocation11 + $0x1], 0 }
  0x17   :  { %34 = vsyncpa [#allocation14], 0 }
  0x18   :  { %36 = vsyncpa [#allocation14 + $0x1], 0 }
  0x19   :  { %37 = vsyncpa [#allocation17], 0 }
  0x1a   :  { %38 = vsyncpa [#allocation9], 0 }
  0x1b   :  { %40 = vsyncpa [#allocation9 + $0x1], 0 }
  0x1c   :  { %41 = vsyncpa [#allocation21], 0 }
  0x1d   :  { %43 = vsyncpa [#allocation21 + $0x1], 0  ;;  %s2202_s0 = smov 0   ;;  %s2204_s1 = smov 0  }
  0x1e   :  { %s2206_s25 = smov 0   ;;  %s2208_s26 = smov 0  }
  0x1f   :  { %s2210_s27 = smov 0   ;;  %s2212_s28 = smov 0  }
  0x20   :  { %s2214_s29 = smov 0   ;;  %s2216_s30 = smov 0  }
  0x21   :  { %s2218_s16 = smov 0   ;;  %s2220_s17 = smov 0  }
  0x22   :  { %s2222_s18 = smov 0  }
  0x23 LB: > { %2842 = sst [smem:[#allocation30_spill]] %s2060_s1  ;;  %s2258_s19 = sadd.s32 4294967295, %s2096_s18   ;;  %s2096_s18 = sphi %s2222_s18, %s49_s18   ;;  %s2092_s17 = sphi %s2220_s17, %s2927_s17   ;;  %s2088_s16 = sphi %s2218_s16, %s2919_s16   ;;  %s2084_s30 = sphi %s2216_s30, %s2926_s30   ;;  %s2080_s29 = sphi %s2214_s29, %s2918_s29   ;;  %s2076_s28 = sphi %s2212_s28, %s2925_s28   ;;  %s2072_s27 = sphi %s2210_s27, %s2924_s27   ;;  %s2068_s26 = sphi %s2208_s26, %s2923_s26   ;;  %s2064_s25 = sphi %s2206_s25, %s2922_s25   ;;  %s2060_s1 = sphi %s2204_s1, %s2921_s1   ;;  %s2056_s0 = sphi %s2202_s0, %s2915_s0  }
  0x24   : > { %2843 = sst [smem:[#allocation31_spill]] %s2068_s26  ;;  %p1409_p5 = scmp.ge.s32.totalorder %s2096_s18, 1 }
  0x25   : > { %2844 = sst [smem:[#allocation32_spill]] %s2080_s29  ;;  %p2796_p6 = scmp.eq.s32.totalorder %s2258_s19, 0 }
  0x26   : > { %2845 = sst [smem:[#allocation33_spill]] %s2084_s30  ;;  %p422_p7 = scmp.lt.s32.totalorder %s2096_s18, 5 }
  0x27   : > { %2846 = sst [smem:[#allocation34_spill]] %s2088_s16  ;;  %s2099_s21 = smov [#allocation16]  }
  0x28   : > { %2847 = sst [smem:[#allocation35_spill]] %s2258_s19  ;;  %p2263_p8 = pnand %p1409_p5, %p422_p7 }
  0x29   : > { %s440_s22 = sshll.u32 %s2099_s21, 4  ;;  %s2850_s8 = sld [smem:[#allocation47_spill]]  ;;  %s441_s22 = int_to_ptr.vmem [resolvable:$true] %s440_s22 }
  0x2a   : > { %s2848_s20 = scalar_select %p2263_p8, 1, 0 }
  0x2b   : > { %p1569_p9 = pneg %p2263_p8 }
  0x2d   : > { %p2271_p10 = pnand %p1569_p9, %p2796_p6 }
  0x2f   : > { %s2849_s23 = scalar_select %p2271_p10, 1, 0 }
  0x30   : > { %s1718_s14 = scalar_lea.hbm %s2850_s8, 2048  ;;  %p2807_p12 = pneg %p2271_p10 }
  0x31   : > { %p1719_p11 = scmp.ne.s32.totalorder %s2850_s8, %s1718_s14  ;;  %p1725_p1 = scmp.lt.u32.totalorder %s1718_s14, %s2850_s8 }
  0x33   : > { %p1721_p13 = pnand %p2807_p12, %p1719_p11 }
  0x35   : > { %p1722_p0 = pneg %p1721_p13 }
  0x37   : > { %p1727_p2 = pnand %p1725_p1, %p1722_p0 }
  0x39   : > { %1730 = shalt.err (!%p1727_p2)
}
  0x3a   : > { %s1731_s15 = scalar_lea.vmem %s441_s22, 2048  ;;  %p1739_p7 = scmp.lt.s32.totalorder %s441_s22, %s441_s22 }
  0x3b   : > { %p1732_p3 = scmp.ne.s32.totalorder %s441_s22, %s1731_s15  ;;  %p1740_p9 = scmp.lt.s32.totalorder %s1731_s15, %s1731_s15 }
  0x3d   : > { %p1734_p4 = pnand %p1732_p3, %p2807_p12  ;;  %p1741_p6 = por %p1740_p9, %p1739_p7 }
  0x3f   : > { %p1735_p5 = pneg %p1734_p4 }
  0x41   : > { %p1742_p8 = pnand %p1741_p6, %p1735_p5 }
  0x43   : > { %1745 = shalt.err (!%p1742_p8)
}
  0x44   : > { %s2798_s12 = smov 128   ;;  %s2799_s10 = smov 8  }
  0x45   : > { %1572 = dma.hbm_to_vmem [thread:$0]  (!%p2271_p10), %s2850_s8, 2048, %s441_s22, [#allocation17], %s2798_s12, %s2798_s12, %s2799_s10  }
  0x46   : > { %s1408_s24 = sadd.s32 4294967294, %s2096_s18   ;;  %p96_p6 = scmp.ne.s32.totalorder %s2076_s28, %s2072_s27 }
  0x47   : > { %p2809_p8 = scmp.eq.s32.totalorder %s2096_s18, 0  ;;  %p102_p11 = scmp.ne.s32.totalorder %s2072_s27, %s2068_s26 }
  0x48   : > { %p383_p13 = scmp.eq.s32.totalorder %s2258_s19, 3  ;;  %p389_p1 = scmp.eq.s32.totalorder %s1408_s24, 3 }
  0x49   : > { %p98_p0 = por %p2809_p8, %p96_p6  ;;  %p2851_p2 = scmp.eq.s32.totalorder %s2258_s19, 0 }
  0x4a   : > { %p2317_p4 = por %p383_p13, %p96_p6  ;;  %p2321_p5 = por %p389_p1, %p102_p11 }
  0x4b   : > { %p2313_p3 = por %p2851_p2, %p102_p11  ;;  %p2808_p7 = scmp.lt.s32.totalorder %s2096_s18, 4 }
  0x4c   : > { %s2853_s22 = scalar_select %p2317_p4, 1, 0 }
  0x4d   : > { %s2852_s13 = scalar_select %p2313_p3, 1, 0 }
  0x4e   : > { %2854 = sst [smem:[#allocation36_spill]] %s2853_s22  ;;  %s2802_s12 = sand.u32 1, %s2076_s28  }
  0x4f   : > { %s2855_s14 = scalar_select %p2321_p5, 1, 0 }
  0x50   : > { %s2806_s10 = sshll.u32 %s2092_s17, 7  ;;  %s2330_s15 = sshll.u32 %s2802_s12, 3 }
  0x51   : > { %2856 = sst [smem:[#allocation37_spill]] %s2855_s14  ;;  %p2334_p9 = pnand %p2808_p7, %p98_p0 }
  0x52   : > { %s2812_s21 = sand.u32 1, %s2096_s18   ;;  %s2858_s4 = sld [smem:[#allocation45_spill]] }
  0x53   : > { %s2857_s24 = scalar_select %p2334_p9, 1, 0 }
  0x54   : > { %s501_s12 = scalar_lea.vmem [#allocation10], %s2330_s15  ;;  %s2351_s9 = scalar_lea.sflag [#allocation11], %s2812_s21 }
  0x55   : > { %s508_s22 = sshll.u32 %s501_s12, 4  ;;  %p2821_p11 = pneg %p2334_p9  ;;  %s2347_s22 = int_to_ptr.vmem [resolvable:$true] %s508_s22 }
  0x58   : > { %s2344_s14 = scalar_lea.hbm %s2858_s4, %s2806_s10  ;;  %s1751_s10 = scalar_lea.hbm %s2858_s4, 256 }
  0x59   : > { %s1746_s30 = scalar_lea.hbm %s2344_s14, 128  ;;  %p1752_p1 = scmp.lt.u32.totalorder %s2344_s14, %s2858_s4 }
  0x5a   : > { %p1747_p6 = scmp.ne.s32.totalorder %s2344_s14, %s1746_s30  ;;  %p1753_p2 = scmp.lt.u32.totalorder %s1751_s10, %s1746_s30 }
  0x5b   : > { %p1755_p7 = scmp.lt.u32.totalorder %s1746_s30, %s2344_s14 }
  0x5c   : > { %p1749_p13 = pnand %p2821_p11, %p1747_p6  ;;  %p1754_p12 = por %p1753_p2, %p1752_p1 }
  0x5e   : > { %p1750_p0 = pneg %p1749_p13  ;;  %p1756_p8 = por %p1755_p7, %p1754_p12 }
  0x60   : > { %p1757_p5 = pnand %p1756_p8, %p1750_p0 }
  0x62   : > { %1760 = shalt.err (!%p1757_p5)
}
  0x63   : > { %s1761_s12 = scalar_lea.vmem %s2347_s22, 128  ;;  %s2102_s8 = smov [#allocation10]  }
  0x64   : > { %p1762_p6 = scmp.ne.s32.totalorder %s2347_s22, %s1761_s12  ;;  %s1766_s26 = sshll.u32 %s2102_s8, 4  ;;  %s1767_s26 = int_to_ptr.vmem [resolvable:$false] %s1766_s26 }
  0x65   : > { %s1768_s3 = scalar_lea.vmem %s1767_s26, 256  ;;  %p1769_p3 = scmp.lt.s32.totalorder %s2347_s22, %s1767_s26 }
  0x66   : > { %p1764_p13 = pnand %p1762_p6, %p2821_p11  ;;  %p1770_p1 = scmp.lt.s32.totalorder %s1768_s3, %s1761_s12 }
  0x68   : > { %p1765_p4 = pneg %p1764_p13  ;;  %p1771_p2 = por %p1770_p1, %p1769_p3 }
  0x6a   : > { %p1772_p12 = pnand %p1771_p2, %p1765_p4 }
  0x6c   : > { %1775 = shalt.err (!%p1772_p12)
}
  0x6d   : > { %1582 = dma.hbm_to_vmem [thread:$0]  (!%p2334_p9), %s2344_s14, 128, %s2347_s22, %s2351_s9  }
  0x6e   : > { %s58_s29 = sadd.s32 1, %s2088_s16  ;;  %s164_s30 = sadd.s32 1, %s2064_s25 }
  0x6f   : > { %p59_p8 = scmp.ge.s32.totalorder %s58_s29, 2  ;;  %p171_p3 = scmp.ne.s32.totalorder %s2064_s25, %s2060_s1 }
  0x70   : > { %p177_p4 = scmp.ne.s32.totalorder %s2060_s1, %s2056_s0  ;;  %s2860_s10 = sadd.s32 1, %s2092_s17 }
  0x71   : > { %s2929_s29 = smov (%p59_p8, %s58_s29), 0  ;;  %s2931_s10 = smov (!%p59_p8, %s2860_s10), %s2092_s17 }
  0x72   : > { %2859 = sst [smem:[#allocation38_spill]] %s2929_s29  ;;  %s160_s12 = ssub.s32 %s2088_s16, %s2929_s29 }
  0x73   : > { %p2861_p5 = scmp.eq.s32.totalorder %s2096_s18, 0  ;;  %p63_p0 = scmp.ge.s32.totalorder %s2931_s10, 2 }
  0x74   : > { %p2863_p6 = scmp.eq.s32.totalorder %s2258_s19, 0  ;;  %s517_s14 = sand.u32 1, %s2064_s25  }
  0x75   : > { %p2394_p7 = por %p171_p3, %p2861_p5  ;;  %s1418_s8 = sshll.u32 %s2092_s17, 1 }
  0x76   : > { %p2400_p13 = por %p177_p4, %p2863_p6  ;;  %s2933_s10 = smov (%p63_p0, %s2931_s10), 0 }
  0x77   : > { %2866 = sst [smem:[#allocation40_spill]] %s2933_s10  ;;  %s2408_s26 = sshll.u32 %s517_s14, 3 }
  0x78   : > { %s2864_s0 = scalar_select %p2400_p13, 1, 0 }
  0x79   : > { %s524_s3 = sadd.s32 %s2088_s16, %s1418_s8  ;;  %s86_s21 = ssub.s32 %s2092_s17, %s2933_s10 }
  0x7a   : > { %2865 = sst [smem:[#allocation39_spill]] %s2864_s0  ;;  %s2413_s4 = sshll.u32 %s524_s3, 7 }
  0x7b   : > { %p87_p1 = scmp.eq.s32.totalorder %s86_s21, 0  ;;  %s161_s29 = sor.u32 %s160_s12, %s86_s21 }
  0x7c   : > { %p162_p2 = scmp.eq.s32.totalorder %s161_s29, 0  ;;  %p2867_p12 = scmp.lt.s32.totalorder %s2096_s18, 4 }
  0x7d   : > { %s2869_s1 = sadd.s32 1, %s2076_s28  ;;  %s2872_s6 = sld [smem:[#allocation46_spill]] }
  0x7e   : > { %p2419_p8 = pnand %p2867_p12, %p2394_p7  ;;  %s539_s21 = scalar_lea.vmem [#allocation13], %s2408_s26 }
  0x7f   : > { %s2426_s14 = scalar_select %p87_p1, %s2076_s28, %s2869_s1  }
  0x80   : > { %s2868_s0 = scalar_select %p2419_p8, 1, 0 }
  0x81   : > { %2870 = sst [smem:[#allocation41_spill]] %s2426_s14  ;;  %s548_s29 = sshll.u32 %s539_s21, 4  ;;  %s2438_s29 = int_to_ptr.vmem [resolvable:$true] %s548_s29 }
  0x82   : > { %s2429_s19 = scalar_select %p162_p2, %s2064_s25, %s164_s30  }
  0x83   : > { %s2435_s3 = scalar_lea.hbm %s2872_s6, %s2413_s4  ;;  %s2103_s12 = smov [#allocation18]  }
  0x84   : > { %2871 = sst [smem:[#allocation42_spill]] %s2429_s19  ;;  %s2440_s22 = sshll.u32 %s2103_s12, 4  ;;  %s460_s22 = int_to_ptr.vmem [resolvable:$true] %s2440_s22 }
  0x85   : > { %s2873_s1 = sand.u32 1, %s2096_s18   ;;  %s1776_s30 = scalar_lea.hbm %s2435_s3, 128 }
  0x86   : > { %s2444_s16 = scalar_lea.sflag [#allocation14], %s2873_s1  ;;  %p1777_p3 = scmp.ne.s32.totalorder %s2435_s3, %s1776_s30 }
  0x87   : > { %p2450_p4 = pneg %p2419_p8  ;;  %s1781_s14 = scalar_lea.hbm %s2872_s6, 512 }
  0x88   : > { %p1782_p0 = scmp.lt.u32.totalorder %s2435_s3, %s2872_s6  ;;  %p1783_p6 = scmp.lt.u32.totalorder %s1781_s14, %s1776_s30 }
  0x89   : > { %s2874_s10 = scalar_select %p2450_p4, 1, 0 }
  0x8a   : > { %p1779_p5 = pnand %p2450_p4, %p1777_p3  ;;  %p1784_p1 = por %p1783_p6, %p1782_p0 }
  0x8b   : > { %p1785_p2 = scmp.lt.u32.totalorder %s1776_s30, %s2435_s3 }
  0x8c   : > { %p1780_p7 = pneg %p1779_p5 }
  0x8d   : > { %p1786_p12 = por %p1785_p2, %p1784_p1 }
  0x8f   : > { %p1787_p11 = pnand %p1786_p12, %p1780_p7 }
  0x91   : > { %1790 = shalt.err (!%p1787_p11)
}
  0x92   : > { %s1791_s1 = scalar_lea.vmem %s2438_s29, 128  ;;  %s2104_s8 = smov [#allocation13]  }
  0x93   : > { %p1792_p3 = scmp.ne.s32.totalorder %s2438_s29, %s1791_s1  ;;  %s1796_s21 = sshll.u32 %s2104_s8, 4  ;;  %s1797_s21 = int_to_ptr.vmem [resolvable:$false] %s1796_s21 }
  0x94   : > { %s1798_s19 = scalar_lea.vmem %s1797_s21, 256  ;;  %p1799_p9 = scmp.lt.s32.totalorder %s2438_s29, %s1797_s21 }
  0x95   : > { %p1794_p5 = pnand %p1792_p3, %p2450_p4  ;;  %p1800_p10 = scmp.lt.s32.totalorder %s1798_s19, %s1791_s1 }
  0x97   : > { %p1795_p13 = pneg %p1794_p5  ;;  %p1801_p0 = por %p1800_p10, %p1799_p9 }
  0x99   : > { %p1802_p6 = pnand %p1801_p0, %p1795_p13 }
  0x9b   : > { %1805 = shalt.err (!%p1802_p6)
}
  0x9c   : > { %1588 = dma.hbm_to_vmem [thread:$0]  (!%p2419_p8), %s2435_s3, 128, %s2438_s29, %s2444_s16  }
  0x9d   : > { %s1806_s12 = scalar_lea.hbm %s2789_s11, 2048  ;;  %p2875_p10 = scmp.ne.s32.totalorder %s2849_s23, 0 }
  0x9e   : > { %p1807_p11 = scmp.ne.s32.totalorder %s2789_s11, %s1806_s12  ;;  %p1813_p1 = scmp.lt.u32.totalorder %s1806_s12, %s2789_s11 }
  0x9f   : > { %p2876_p9 = pneg %p2875_p10 }
  0xa1   : > { %p1809_p13 = pnand %p1807_p11, %p2876_p9 }
  0xa3   : > { %p1810_p7 = pneg %p1809_p13 }
  0xa5   : > { %p1815_p2 = pnand %p1813_p1, %p1810_p7 }
  0xa7   : > { %1818 = shalt.err (!%p1815_p2)
}
  0xa8   : > { %s1819_s3 = scalar_lea.vmem %s460_s22, 2048  ;;  %p2877_p3 = pmov %p2876_p9 }
  0xa9   : > { %p1820_p12 = scmp.ne.s32.totalorder %s460_s22, %s1819_s3  ;;  %p1827_p6 = scmp.lt.s32.totalorder %s460_s22, %s460_s22 }
  0xaa   : > { %p1828_p8 = scmp.lt.s32.totalorder %s1819_s3, %s1819_s3 }
  0xab   : > { %p1822_p5 = pnand %p1820_p12, %p2877_p3 }
  0xac   : > { %p1829_p4 = por %p1828_p8, %p1827_p6 }
  0xad   : > { %p1823_p0 = pneg %p1822_p5 }
  0xaf   : > { %p1830_p9 = pnand %p1829_p4, %p1823_p0 }
  0xb1   : > { %1833 = shalt.err (!%p1830_p9)
}
  0xb2   : > { %s2878_s6 = smov 8   ;;  %s2879_s29 = smov 128  }
  0xb3   : > { %1575 = dma.hbm_to_vmem [thread:$0]  (!%p2875_p10), %s2789_s11, 2048, %s460_s22, [#allocation17], %s2879_s29, %s2879_s29, %s2878_s6  }
  0xb4   : > { %s2880_s30 = sshll.u32 %s2092_s17, 7  ;;  %s2881_s2 = sld [smem:[#allocation43_spill]] }
  0xb5   : > { %s483_s23 = scalar_lea.vmem [#allocation7], %s2330_s15  ;;  %s2512_s14 = scalar_lea.hbm %s2783_s5, %s2413_s4 }
  0xb6   : > { %s490_s21 = sshll.u32 %s483_s23, 4  ;;  %s2882_s22 = sand.u32 1, %s2076_s28   ;;  %s2506_s21 = int_to_ptr.vmem [resolvable:$true] %s490_s21 }
  0xb7   : > { %s480_s6 = scalar_lea.sflag [#allocation8], %s2882_s22  ;;  %p2883_p4 = scmp.ne.s32.totalorder %s2857_s24, 0 }
  0xb9   : > { %p2884_p11 = pneg %p2883_p4 }
  0xba   : > { %s2503_s1 = scalar_lea.hbm %s2881_s2, %s2880_s30  ;;  %s1839_s15 = scalar_lea.hbm %s2881_s2, 256 }
  0xbb   : > { %s1834_s29 = scalar_lea.hbm %s2503_s1, 128  ;;  %p1840_p7 = scmp.lt.u32.totalorder %s2503_s1, %s2881_s2 }
  0xbc   : > { %p1835_p8 = scmp.ne.s32.totalorder %s2503_s1, %s1834_s29  ;;  %p1841_p1 = scmp.lt.u32.totalorder %s1839_s15, %s1834_s29 }
  0xbd   : > { %p1843_p12 = scmp.lt.u32.totalorder %s1834_s29, %s2503_s1 }
  0xbe   : > { %p1837_p10 = pnand %p1835_p8, %p2884_p11  ;;  %p1842_p2 = por %p1841_p1, %p1840_p7 }
  0xc0   : > { %p1838_p13 = pneg %p1837_p10  ;;  %p1844_p3 = por %p1843_p12, %p1842_p2 }
  0xc2   : > { %p1845_p5 = pnand %p1844_p3, %p1838_p13 }
  0xc4   : > { %1848 = shalt.err (!%p1845_p5)
}
  0xc5   : > { %s1849_s3 = scalar_lea.vmem %s2506_s21, 128  ;;  %p2885_p6 = pmov %p2884_p11 }
  0xc6   : > { %p1850_p0 = scmp.ne.s32.totalorder %s2506_s21, %s1849_s3  ;;  %s2105_s19 = smov [#allocation7]  }
  0xc7   : > { %s1854_s22 = sshll.u32 %s2105_s19, 4  ;;  %s1855_s22 = int_to_ptr.vmem [resolvable:$false] %s1854_s22 }
  0xc8   : > { %p1852_p9 = pnand %p1850_p0, %p2885_p6  ;;  %s1856_s30 = scalar_lea.vmem %s1855_s22, 256 }
  0xc9   : > { %p1857_p11 = scmp.lt.s32.totalorder %s2506_s21, %s1855_s22  ;;  %p1858_p10 = scmp.lt.s32.totalorder %s1856_s30, %s1849_s3 }
  0xca   : > { %p1853_p8 = pneg %p1852_p9 }
  0xcb   : > { %p1859_p7 = por %p1858_p10, %p1857_p11 }
  0xcd   : > { %p1860_p1 = pnand %p1859_p7, %p1853_p8 }
  0xcf   : > { %1863 = shalt.err (!%p1860_p1)
}
  0xd0   : > { %1579 = dma.hbm_to_vmem [thread:$0]  (!%p2883_p4), %s2503_s1, 128, %s2506_s21, %s480_s6  }
  0xd1   : > { %s519_s29 = scalar_lea.vmem [#allocation12], %s2408_s26  ;;  %s2544_s23 = scalar_lea.hbm %s2785_s7, %s2413_s4 }
  0xd2   : > { %s528_s12 = sshll.u32 %s519_s29, 4  ;;  %s1864_s3 = scalar_lea.hbm %s2512_s14, 128  ;;  %s529_s12 = int_to_ptr.vmem [resolvable:$true] %s528_s12 }
  0xd3   : > { %p1865_p13 = scmp.ne.s32.totalorder %s2512_s14, %s1864_s3  ;;  %p2886_p2 = scmp.ne.s32.totalorder %s2874_s10, 0 }
  0xd4   : > { %s1869_s22 = scalar_lea.hbm %s2783_s5, 512  ;;  %p1870_p4 = scmp.lt.u32.totalorder %s2512_s14, %s2783_s5 }
  0xd5   : > { %p1867_p12 = pnand %p1865_p13, %p2886_p2  ;;  %p1871_p5 = scmp.lt.u32.totalorder %s1869_s22, %s1864_s3 }
  0xd6   : > { %p1873_p6 = scmp.lt.u32.totalorder %s1864_s3, %s2512_s14 }
  0xd7   : > { %p1868_p3 = pneg %p1867_p12  ;;  %p1872_p0 = por %p1871_p5, %p1870_p4 }
  0xd9   : > { %p1874_p9 = por %p1873_p6, %p1872_p0 }
  0xdb   : > { %p1875_p8 = pnand %p1874_p9, %p1868_p3 }
  0xdd   : > { %1878 = shalt.err (!%p1875_p8)
}
  0xde   : > { %s1879_s4 = scalar_lea.vmem %s529_s12, 128  ;;  %s2106_s1 = smov [#allocation12]  }
  0xdf   : > { %p1880_p11 = scmp.ne.s32.totalorder %s529_s12, %s1879_s4  ;;  %s1884_s21 = sshll.u32 %s2106_s1, 4  ;;  %s1885_s21 = int_to_ptr.vmem [resolvable:$false] %s1884_s21 }
  0xe0   : > { %s1886_s6 = scalar_lea.vmem %s1885_s21, 256  ;;  %p1887_p1 = scmp.lt.s32.totalorder %s529_s12, %s1885_s21 }
  0xe1   : > { %p1882_p10 = pnand %p1880_p11, %p2886_p2  ;;  %p1888_p13 = scmp.lt.s32.totalorder %s1886_s6, %s1879_s4 }
  0xe3   : > { %p1883_p7 = pneg %p1882_p10  ;;  %p1889_p12 = por %p1888_p13, %p1887_p1 }
  0xe5   : > { %p1890_p4 = pnand %p1889_p12, %p1883_p7 }
  0xe7   : > { %1893 = shalt.err (!%p1890_p4)
}
  0xe8   : > { %p2887_p5 = scmp.ne.s32.totalorder %s2868_s0, 0  ;;  %s559_s2 = scalar_lea.vmem [#allocation15], %s2408_s26 }
  0xe9   : > { %s568_s29 = sshll.u32 %s559_s2, 4  ;;  %s1894_s15 = scalar_lea.hbm %s2544_s23, 128  ;;  %s569_s29 = int_to_ptr.vmem [resolvable:$true] %s568_s29 }
  0xea   : > { %1585 = dma.hbm_to_vmem [thread:$0]  (!%p2887_p5), %s2512_s14, 128, %s529_s12, %s2351_s9  }
  0xeb   : > { %p1895_p3 = scmp.ne.s32.totalorder %s2544_s23, %s1894_s15  ;;  %s1899_s24 = scalar_lea.hbm %s2785_s7, 512 }
  0xec   : > { %p1900_p9 = scmp.lt.u32.totalorder %s2544_s23, %s2785_s7  ;;  %p1901_p8 = scmp.lt.u32.totalorder %s1899_s24, %s1894_s15 }
  0xed   : > { %p1897_p0 = pnand %p1895_p3, %p2886_p2  ;;  %p1903_p10 = scmp.lt.u32.totalorder %s1894_s15, %s2544_s23 }
  0xee   : > { %p1902_p11 = por %p1901_p8, %p1900_p9 }
  0xef   : > { %p1898_p6 = pneg %p1897_p0 }
  0xf0   : > { %p1904_p7 = por %p1903_p10, %p1902_p11 }
  0xf2   : > { %p1905_p1 = pnand %p1904_p7, %p1898_p6 }
  0xf4   : > { %1908 = shalt.err (!%p1905_p1)
}
  0xf5   : > { %s1909_s9 = scalar_lea.vmem %s569_s29, 128  ;;  %s2107_s26 = smov [#allocation15]  }
  0xf6   : > { %p1910_p13 = scmp.ne.s32.totalorder %s569_s29, %s1909_s9  ;;  %s1914_s14 = sshll.u32 %s2107_s26, 4  ;;  %s1915_s14 = int_to_ptr.vmem [resolvable:$false] %s1914_s14 }
  0xf7   : > { %s1916_s12 = scalar_lea.vmem %s1915_s14, 256  ;;  %p1917_p3 = scmp.lt.s32.totalorder %s569_s29, %s1915_s14 }
  0xf8   : > { %p1912_p12 = pnand %p1910_p13, %p2886_p2  ;;  %p1918_p0 = scmp.lt.s32.totalorder %s1916_s12, %s1909_s9 }
  0xfa   : > { %p1913_p4 = pneg %p1912_p12  ;;  %p1919_p5 = por %p1918_p0, %p1917_p3 }
  0xfc   : > { %p1920_p8 = pnand %p1919_p5, %p1913_p4 }
  0xfe   : > { %1923 = shalt.err (!%p1920_p8)
}
  0xff   : > { %p2888_p9 = scmp.ne.s32.totalorder %s2868_s0, 0  ;;  %p2889_p6 = scmp.ne.s32.totalorder %s2848_s20, 0 }
 0x100   : > { %s2586_s10 = sand.u32 (!%p2889_p6), 1, %s2072_s27   ;;  %p2890_p2 = scmp.ne.s32.totalorder (!%p2889_p6), %s2852_s13, 0 }
 0x101   : > { %1591 = dma.hbm_to_vmem [thread:$0]  (!%p2888_p9), %s2544_s23, 128, %s569_s29, %s2444_s16  }
 0x102   : > { %577 = sbr.rel (%p2889_p6) target bundleno = 1938 (0x792), region = 72  ;;  %s2589_s30 = sshll.u32 (!%p2889_p6), %s2586_s10, 3 }
 0x103   : > { %s580_s4 = scalar_lea.sflag (!%p2889_p6), [#allocation8], %s2586_s10  ;;  %s583_s1 = scalar_lea.vmem (!%p2889_p6), [#allocation7], %s2589_s30 }
 0x109   : > { %2027 = dma.done.wait (%p2890_p2), %s580_s4, 128  }
 0x10a   : > { %2029 = vsyncadd (%p2890_p2), %s580_s4, 4294967168  ;;  %s2891_s16 = sld [smem:[#allocation35_spill]]  ;;  %s592_s23 = scalar_lea.vmem [#allocation10], %s2589_s30 }
 0x110   : > { %s588_s20 = sand.u32 1, %s2891_s16  }
 0x111   : > { %s589_s0 = scalar_lea.sflag [#allocation11], %s588_s20 }
 0x112   : > { %2031 = dma.done.wait (%p2890_p2), %s589_s0, 128  }
 0x113   : > { %2033 = vsyncadd (%p2890_p2), %s589_s0, 4294967168  ;;  %s2892_s21 = sld [smem:[#allocation30_spill]]  ;;  %s2893_s6 = sld [smem:[#allocation39_spill]] }
 0x119   : > { %s599_s2 = sand.u32 1, %s2892_s21   ;;  %p2894_p5 = scmp.ne.s32.totalorder %s2893_s6, 0 }
 0x11a   : > { %s2604_s29 = sshll.u32 %s599_s2, 3 }
 0x11b   : > { %s601_s15 = scalar_lea.vmem [#allocation12], %s2604_s29 }
 0x11c   : > { %2035 = dma.done.wait (%p2894_p5), %s589_s0, 128  }
 0x11d   : > { %2037 = vsyncadd (%p2894_p5), %s589_s0, 4294967168  ;;  %s607_s8 = scalar_lea.sflag [#allocation14], %s588_s20  ;;  %s610_s3 = scalar_lea.vmem [#allocation13], %s2604_s29 }
 0x11e   : > { %2039 = dma.done.wait (%p2894_p5), %s607_s8, 256  }
 0x11f   : > { %2041 = vsyncadd (%p2894_p5), %s607_s8, 4294967040  ;;  %s619_s13 = scalar_lea.vmem [#allocation15], %s2604_s29  ;;  %p2895_p11 = scmp.eq.s32.totalorder %s2891_s16, 0 }
 0x121   : > { %2043 = dma.done.wait (%p2895_p11), [#allocation17], 4096   ;;  %p2896_p10 = pmov %p2895_p11 }
 0x122   : > { %s689_s24 = scalar_lea.vmem [#allocation19], %s2589_s30  ;;  %s696_s19 = scalar_lea.vmem [#allocation20], %s2589_s30 }
 0x123   : > { %2045 = vsyncadd (%p2896_p10), [#allocation17], 4294963200  ;;  %s2897_s22 = sld [smem:[#allocation32_spill]] }
 0x129   : > { %p1436_p7 = scmp.ne.s32.totalorder %s2897_s22, 0 }
 0x12a   : > { %v704_v0 = vlaneseq (!%p1436_p7)  ;;  %s2898_s14 = sld [smem:[#allocation44_spill]] (!%p1436_p7)  ;;  %vm735_vm0 = vcmask (!%p1436_p7), 1043456   ;;  %v1437_v2 = vld [vmem:[%s592_s23] ss:$0 sm:$0xff] (!%p1436_p7)  ;;  %v2108_v3 = vmov (!%p1436_p7), 0.0   ;;  %vm2109_vm1 = vmmov (!%p1436_p7), 0  }
 0x12b   : > { %701 = sbr.rel (%p1436_p7) target bundleno = 844 (0x34c), region = 104  ;;  %702 = vst [vmem:[#allocation2] sm:$0xff] (!%p1436_p7), %v2108_v3  ;;  %1483 = vmatprep.subr.bf16.mxu0 (!%p1436_p7), %v2108_v3  ;;  %1489 = vmatprep.subr.bf16.mxu1 (!%p1436_p7), %v2108_v3  ;;  %vm731_vm3 = vcmask (!%p1436_p7), 64512   ;;  %v779_v10 = vld [vmem:[%s583_s1] sm:$0xff] (!%p1436_p7) }
 0x12c   : > { %v705_v5 = vshrl.u32 (!%p1436_p7), %v704_v0, 7  ;;  %1485 = vmatprep.mubr.msk.bf16.mxu0 (!%p1436_p7), %vm2109_vm1, %v2108_v3  ;;  %1491 = vmatprep.mubr.msk.bf16.mxu1 (!%p1436_p7), %vm2109_vm1, %v2108_v3 }
 0x12e   : > { %vm710_vm2 = vcmp.eq.s32.totalorder (!%p1436_p7), %v705_v5, %v1437_v2 }
 0x12f   : > { %v711_v7 = vsel (!%p1436_p7), %vm710_vm2, 1.0, %v2108_v3 }
 0x130   : > { %v713_v1 = vld [vmem:[%s2898_s14] sm:$0xff] (!%p1436_p7)  ;;  %v712_v8 = vpack.c.bf16 (!%p1436_p7), %v711_v7, %v711_v7 }
 0x131   : > { %v714_v4 = vpack.c.bf16 (!%p1436_p7), %v713_v1, %v713_v1 }
 0x132   : > { %715 = vxpose.xlu0.c.b16.start.end [1/1] (short) (narrow) %v712_v8, 16 }
 0x133   : > { %v737_v6 = vsel %vm735_vm0, %v714_v4, 0 }
 0x134   : > { %1484 = vmatpush3.bf16.msra.mxu0 %v737_v6 }
 0x198   : > { %v723_v9 = vpop.trf.xlu0 }
 0x199   : > { %1486 = vmatmul.mubr.msk.bf16.vlgmr.msra.gmra.mrb[0].mxu0 %vm731_vm3, %v723_v9 }
 0x26c   : > { %v773_v11 = vpop.f32.mrb[0].mxu0 }
 0x26d   : > { %v780_v12 = vadd.f32 %v779_v10, %v773_v11  ;;  %v1487_v13 = vpop.f32.mrb[1].mxu0 }
 0x26e   : > { %v776_v14 = vpop.f32.mrb[2].mxu0 }
 0x26f   : > { %781 = vst [vmem:[#allocation3] sm:$0xff] %v780_v12  ;;  %v1488_v15 = vpop.f32.mrb[3].mxu0  ;;  %v782_v16 = vpack.c.bf16 %v780_v12, %v780_v12 }
 0x271   : > { %v787_v17 = vsel %vm735_vm0, %v782_v16, 0 }
 0x272   : > { %1490 = vmatpush3.bf16.msra.mxu1 %v787_v17 }
 0x275   : > { %1492 = vmatmul.mubr.msk.bf16.vlgmr.msra.gmra.mrb[0].mxu1 %vm731_vm3, %v712_v8 }
 0x348   : > { %v823_v18 = vpop.f32.mrb[0].mxu1 }
 0x349   : > { %829 = vst [vmem:[%s696_s19] sm:$0xff] %v823_v18  ;;  %v1493_v19 = vpop.f32.mrb[1].mxu1 }
 0x34a   : > { %v826_v20 = vpop.f32.mrb[2].mxu1 }
 0x34b   : > { %v1494_v21 = vpop.f32.mrb[3].mxu1 }
 0x34c PF: > { %s2899_s12 = sld [smem:[#allocation32_spill]]  ;;  %s2900_s4 = sld [smem:[#allocation33_spill]] }
 0x352   : > { %s1440_s1 = sshll.u32 %s2899_s12, 3  ;;  %s831_s16 = sld [smem:[#allocation5 + %s2900_s4]] }
 0x358   : > { %p1441_p1 = scmp.ge.s32.totalorder %s1440_s1, %s831_s16 }
 0x359   : > { %v1442_v22 = vld [vmem:[%s610_s3 + $0x1] ss:$0 sm:$0xff] (!%p1441_p1)  ;;  %v838_v23 = vlaneseq (!%p1441_p1)  ;;  %v1444_v24 = vld [vmem:[%s610_s3] ss:$0 sm:$0xff] (!%p1441_p1)  ;;  %v2110_v25 = vmov (!%p1441_p1), 0.0   ;;  %s2901_s23 = sld [smem:[#allocation44_spill]] (!%p1441_p1) }
 0x35a   : > { %835 = sbr.rel (%p1441_p1) target bundleno = 1407 (0x57f), region = 108  ;;  %1495 = vmatprep.subr.bf16.mxu0 (!%p1441_p1), %v2110_v25  ;;  %vm869_vm4 = vcmask (!%p1441_p1), 1043456   ;;  %1501 = vmatprep.subr.bf16.mxu1 (!%p1441_p1), %v2110_v25  ;;  %vm2111_vm5 = vmmov (!%p1441_p1), 0   ;;  %vm865_vm8 = vcmask (!%p1441_p1), 64512   ;;  %v913_v34 = vld [vmem:[%s601_s15] sm:$0xff] (!%p1441_p1)  ;;  %v925_v46 = vld [vmem:[#allocation2] sm:$0xff] (!%p1441_p1) }
 0x35b   : > { %v839_v27 = vshrl.u32 (!%p1441_p1), %v838_v23, 7  ;;  %1497 = vmatprep.mubr.msk.bf16.mxu0 (!%p1441_p1), %vm2111_vm5, %v2110_v25  ;;  %1503 = vmatprep.mubr.msk.bf16.mxu1 (!%p1441_p1), %vm2111_vm5, %v2110_v25  ;;  %v915_v36 = vld [vmem:[%s619_s13] sm:$0xff] (!%p1441_p1) }
 0x35d   : > { %vm844_vm6 = vcmp.eq.s32.totalorder (!%p1441_p1), %v839_v27, %v1442_v22  ;;  %vm922_vm7 = vcmp.eq.s32.totalorder (!%p1441_p1), %v839_v27, %v1444_v24 }
 0x35e   : > { %v845_v30 = vsel (!%p1441_p1), %vm844_vm6, 1.0, %v2110_v25  ;;  %v923_v31 = vsel (!%p1441_p1), %vm922_vm7, 1.0, %v2110_v25 }
 0x35f   : > { %v847_v26 = vld [vmem:[%s2901_s23] sm:$0xff] (!%p1441_p1)  ;;  %v846_v32 = vpack.c.bf16 (!%p1441_p1), %v845_v30, %v845_v30  ;;  %v924_v44 = vpack.c.bf16 (!%p1441_p1), %v923_v31, %v923_v31 }
 0x360   : > { %v848_v28 = vpack.c.bf16 (!%p1441_p1), %v847_v26, %v847_v26 }
 0x361   : > { %849 = vxpose.xlu0.c.b16.start.end [1/1] (short) (narrow) %v846_v32, 16 }
 0x362   : > { %v871_v29 = vsel %vm869_vm4, %v848_v28, 0 }
 0x363   : > { %1496 = vmatpush3.bf16.msra.mxu0 %v871_v29 }
 0x3c7   : > { %v857_v33 = vpop.trf.xlu0 }
 0x3c8   : > { %1498 = vmatmul.mubr.msk.bf16.vlgmr.msra.gmra.mrb[0].mxu0 %vm865_vm8, %v857_v33 }
 0x49b   : > { %v907_v35 = vpop.f32.mrb[0].mxu0 }
 0x49c   : > { %v914_v37 = vadd.f32 %v913_v34, %v907_v35  ;;  %v1499_v38 = vpop.f32.mrb[1].mxu0 }
 0x49d   : > { %v910_v39 = vpop.f32.mrb[2].mxu0 }
 0x49e   : > { %v916_v40 = vadd.f32 %v915_v36, %v914_v37  ;;  %v1500_v41 = vpop.f32.mrb[3].mxu0 }
 0x4a0   : > { %v917_v42 = vmax.f32 %v916_v40, 0.0 }
 0x4a2   : > { %v926_v43 = vpack.c.bf16 %v917_v42, %v917_v42 }
 0x4a4   : > { %v931_v45 = vsel %vm869_vm4, %v926_v43, 0 }
 0x4a5   : > { %1502 = vmatpush3.bf16.msra.mxu1 %v931_v45 }
 0x4a8   : > { %1504 = vmatmul.mubr.msk.bf16.vlgmr.msra.gmra.mrb[0].mxu1 %vm865_vm8, %v924_v44 }
 0x57b   : > { %v967_v47 = vpop.f32.mrb[0].mxu1 }
 0x57c   : > { %v973_v48 = vadd.f32 %v967_v47, %v925_v46  ;;  %v1505_v49 = vpop.f32.mrb[1].mxu1 }
 0x57d   : > { %v970_v50 = vpop.f32.mrb[2].mxu1 }
 0x57e   : > { %974 = vst [vmem:[#allocation2] sm:$0xff] %v973_v48  ;;  %v1506_v51 = vpop.f32.mrb[3].mxu1 }
 0x57f PF: > { %s2902_s21 = sld [smem:[#allocation32_spill]] }
 0x585   : > { %p1446_p13 = scmp.ne.s32.totalorder %s2902_s21, 1 }
 0x586   : > { %v987_v52 = vld [vmem:[#allocation16] sm:$0xff] (!%p1446_p13)  ;;  %v988_v53 = vld [vmem:[#allocation16 + $0x8] sm:$0xff] (!%p1446_p13)  ;;  %v989_v54 = vld [vmem:[#allocation16 + $0x10] sm:$0xff] (!%p1446_p13)  ;;  %v2112_v55 = vmov (!%p1446_p13), 0.0   ;;  %vm2113_vm9 = vmmov (!%p1446_p13), 0   ;;  %s2656_s6 = sld [smem:[#allocation6]] (!%p1446_p13) }
 0x587   : > { %978 = sbr.rel (%p1446_p13) target bundleno = 1887 (0x75f), region = 112  ;;  %1507 = vmatprep.subr.bf16.mxu0 (!%p1446_p13), %v2112_v55  ;;  %v1003_v56 = vpack.c.bf16 (!%p1446_p13), %v988_v53, %v987_v52  ;;  %v990_v57 = vld [vmem:[#allocation16 + $0x18] sm:$0xff] (!%p1446_p13)  ;;  %1523 = vmatprep.mubr.msk.bf16.mxu0 (!%p1446_p13), %vm2113_vm9, %v2112_v55  ;;  %v991_v59 = vld [vmem:[#allocation16 + $0x20] sm:$0xff] (!%p1446_p13)  ;;  %v992_v60 = vld [vmem:[#allocation16 + $0x28] sm:$0xff] (!%p1446_p13)  ;;  %s2903_s8 = sld [smem:[#allocation48_spill]] (!%p1446_p13) }
 0x588   : > { %1527 = vmatprep.subr.bf16.mxu1 (!%p1446_p13), %v2112_v55  ;;  %1543 = vmatprep.mubr.msk.bf16.mxu1 (!%p1446_p13), %vm2113_vm9, %v2112_v55  ;;  %v1004_v58 = vpack.c.bf16 (!%p1446_p13), %v990_v57, %v989_v54  ;;  %v1069_v61 = vld [vmem:[#allocation18] sm:$0xff] (!%p1446_p13)  ;;  %v1070_v62 = vld [vmem:[#allocation18 + $0x8] sm:$0xff] (!%p1446_p13)  ;;  %v1071_v63 = vld [vmem:[#allocation18 + $0x10] sm:$0xff] (!%p1446_p13)  ;;  %v1005_v0 = vpack.c.bf16 (!%p1446_p13), %v992_v60, %v991_v59  ;;  %s2904_s22 = sld [smem:[#allocation49_spill]] (!%p1446_p13)  ;;  %s2905_s14 = sld [smem:[#allocation50_spill]] (!%p1446_p13) }
 0x589   : > { %1508 = vmatpush3.bf16.msra.mxu0 (!%p1446_p13), %v1003_v56  ;;  %v1085_v1 = vpack.c.bf16 (!%p1446_p13), %v1070_v62, %v1069_v61  ;;  %v1072_v2 = vld [vmem:[#allocation18 + $0x18] sm:$0xff] (!%p1446_p13)  ;;  %v993_v3 = vld [vmem:[#allocation16 + $0x30] sm:$0xff] (!%p1446_p13)  ;;  %v1073_v6 = vld [vmem:[#allocation18 + $0x20] sm:$0xff] (!%p1446_p13)  ;;  %s2906_s1 = sld [smem:[#allocation51_spill]] (!%p1446_p13) }
 0x58a   : > { %1509 = vmatprep.subr.bf16.mxu0 (!%p1446_p13), %v2112_v55  ;;  %v994_v4 = vld [vmem:[#allocation16 + $0x38] sm:$0xff] (!%p1446_p13)  ;;  %v1086_v5 = vpack.c.bf16 (!%p1446_p13), %v1072_v2, %v1071_v63  ;;  %v1074_v7 = vld [vmem:[#allocation18 + $0x28] sm:$0xff] (!%p1446_p13)  ;;  %v995_v9 = vld [vmem:[#allocation16 + $0x40] sm:$0xff] (!%p1446_p13) }
 0x58b   : > { %1528 = vmatpush3.bf16.msra.mxu1 (!%p1446_p13), %v1085_v1  ;;  %v1006_v8 = vpack.c.bf16 (!%p1446_p13), %v994_v4, %v993_v3  ;;  %v996_v10 = vld [vmem:[#allocation16 + $0x48] sm:$0xff] (!%p1446_p13)  ;;  %v1087_v11 = vpack.c.bf16 (!%p1446_p13), %v1074_v7, %v1073_v6  ;;  %v1075_v12 = vld [vmem:[#allocation18 + $0x30] sm:$0xff] (!%p1446_p13)  ;;  %v1076_v13 = vld [vmem:[#allocation18 + $0x38] sm:$0xff] (!%p1446_p13) }
 0x58c   : > { %1529 = vmatprep.subr.bf16.mxu1 (!%p1446_p13), %v2112_v55  ;;  %v1007_v14 = vpack.c.bf16 (!%p1446_p13), %v996_v10, %v995_v9  ;;  %s980_s2 = sadd.f32 (!%p1446_p13), 1.0, %s2656_s6  ;;  %v997_v15 = vld [vmem:[#allocation16 + $0x50] sm:$0xff] (!%p1446_p13)  ;;  %v998_v16 = vld [vmem:[#allocation16 + $0x58] sm:$0xff] (!%p1446_p13)  ;;  %v1088_v17 = vpack.c.bf16 (!%p1446_p13), %v1076_v13, %v1075_v12  ;;  %v1077_v18 = vld [vmem:[#allocation18 + $0x40] sm:$0xff] (!%p1446_p13) }
 0x58d   : > { %1510 = vmatpush3.bf16.msra.mxu0 (!%p1446_p13), %v1004_v58  ;;  %v1078_v19 = vld [vmem:[#allocation18 + $0x48] sm:$0xff] (!%p1446_p13)  ;;  %v1008_v20 = vpack.c.bf16 (!%p1446_p13), %v998_v16, %v997_v15  ;;  %v999_v23 = vld [vmem:[#allocation16 + $0x60] sm:$0xff] (!%p1446_p13)  ;;  %v1079_v27 = vld [vmem:[#allocation18 + $0x50] sm:$0xff] (!%p1446_p13) }
 0x58e   : > { %1511 = vmatprep.subr.bf16.mxu0 %v2112_v55  ;;  %v981_v21 = vld [vmem:[#allocation3] sm:$0xff]  ;;  %v982_v22 = vstv %s980_s2  ;;  %v1089_v25 = vpack.c.bf16 %v1078_v19, %v1077_v18  ;;  %v1080_v28 = vld [vmem:[#allocation18 + $0x58] sm:$0xff]  ;;  %v984_v30 = vld [vmem:[#allocation2] sm:$0xff] }
 0x58f   : > { %1530 = vmatpush3.bf16.msra.mxu1 %v1086_v5  ;;  %v1000_v24 = vld [vmem:[#allocation16 + $0x68] sm:$0xff]  ;;  %v983_v26 = vmul.f32 %v982_v22, %v981_v21  ;;  %v1001_v31 = vld [vmem:[#allocation16 + $0x70] sm:$0xff]  ;;  %v1002_v32 = vld [vmem:[#allocation16 + $0x78] sm:$0xff]  ;;  %v1090_v33 = vpack.c.bf16 %v1080_v28, %v1079_v27 }
 0x590   : > { %1531 = vmatprep.subr.bf16.mxu1 %v2112_v55  ;;  %v1009_v29 = vpack.c.bf16 %v1000_v24, %v999_v23  ;;  %v1010_v35 = vpack.c.bf16 %v1002_v32, %v1001_v31  ;;  %v1081_v37 = vld [vmem:[#allocation18 + $0x60] sm:$0xff]  ;;  %v1082_v38 = vld [vmem:[#allocation18 + $0x68] sm:$0xff]  ;;  %v1083_v40 = vld [vmem:[#allocation18 + $0x70] sm:$0xff] }
 0x591   : > { %1512 = vmatpush3.bf16.msra.mxu0 %v1005_v0  ;;  %v985_v34 = vadd.f32 %v984_v30, %v983_v26  ;;  %v1091_v39 = vpack.c.bf16 %v1082_v38, %v1081_v37  ;;  %v1084_v41 = vld [vmem:[#allocation18 + $0x78] sm:$0xff]  ;;  %v1447_v43 = vld [vmem:[%s2903_s8] ss:$0 sm:$0xff] }
 0x592   : > { %1513 = vmatprep.subr.bf16.mxu0 %v2112_v55  ;;  %v1092_v42 = vpack.c.bf16 %v1084_v41, %v1083_v40  ;;  %v1448_v45 = vld [vmem:[%s2904_s22] ss:$0 sm:$0xff] }
 0x593   : > { %1532 = vmatpush3.bf16.msra.mxu1 %v1087_v11  ;;  %v986_v36 = vpack.c.bf16 %v985_v34, %v985_v34  ;;  %v1449_v53 = vld [vmem:[%s2905_s14] ss:$0 sm:$0xff] }
 0x594   : > { %1533 = vmatprep.subr.bf16.mxu1 %v2112_v55 }
 0x595   : > { %1514 = vmatpush3.bf16.msra.mxu0 %v1006_v8 }
 0x596   : > { %1515 = vmatprep.subr.bf16.mxu0 %v2112_v55 }
 0x597   : > { %1534 = vmatpush3.bf16.msra.mxu1 %v1088_v17 }
 0x598   : > { %1535 = vmatprep.subr.bf16.mxu1 %v2112_v55 }
 0x599   : > { %1516 = vmatpush3.bf16.msra.mxu0 %v1007_v14 }
 0x59a   : > { %1517 = vmatprep.subr.bf16.mxu0 %v2112_v55 }
 0x59b   : > { %1536 = vmatpush3.bf16.msra.mxu1 %v1089_v25 }
 0x59c   : > { %1537 = vmatprep.subr.bf16.mxu1 %v2112_v55 }
 0x59d   : > { %1518 = vmatpush3.bf16.msra.mxu0 %v1008_v20 }
 0x59e   : > { %1519 = vmatprep.subr.bf16.mxu0 %v2112_v55 }
 0x59f   : > { %1538 = vmatpush3.bf16.msra.mxu1 %v1090_v33 }
 0x5a0   : > { %1539 = vmatprep.subr.bf16.mxu1 %v2112_v55 }
 0x5a1   : > { %1520 = vmatpush3.bf16.msra.mxu0 %v1009_v29 }
 0x5a2   : > { %1521 = vmatprep.subr.bf16.mxu0 %v2112_v55 }
 0x5a3   : > { %1540 = vmatpush3.bf16.msra.mxu1 %v1091_v39 }
 0x5a4   : > { %1541 = vmatprep.subr.bf16.mxu1 %v2112_v55  ;;  %v1450_v55 = vld [vmem:[%s2906_s1] ss:$0 sm:$0xff] }
 0x5a5   : > { %1522 = vmatpush3.bf16.msra.mxu0 %v1010_v35 }
 0x5a7   : > { %1542 = vmatpush3.bf16.msra.mxu1 %v1092_v42 }
 0x5a8   : > { %1524 = vmatmul.mubr.bf16.vlgmr.msra.gmra.mrb[0].mxu0 %v986_v36 }
 0x67b   : > { %v1045_v44 = vpop.f32.mrb[0].mxu0 }
 0x67c   : > { %v1058_v46 = vmul.f32 %v1447_v43, %v1045_v44  ;;  %v1525_v47 = vpop.f32.mrb[1].mxu0 }
 0x67d   : > { %v1048_v48 = vpop.f32.mrb[2].mxu0 }
 0x67e   : > { %v1066_v49 = vadd.f32 %v1448_v45, %v1058_v46  ;;  %v1526_v50 = vpop.f32.mrb[3].mxu0 }
 0x680   : > { %v1067_v51 = vmax.f32 %v1066_v49, 0.0 }
 0x682   : > { %v1068_v52 = vpack.c.bf16 %v1067_v51, %v1067_v51 }
 0x684   : > { %1544 = vmatmul.mubr.bf16.vlgmr.msra.gmra.mrb[0].mxu1 %v1068_v52 }
 0x757   : > { %v1127_v54 = vpop.f32.mrb[0].mxu1 }
 0x758   : > { %v1140_v56 = vmul.f32 %v1449_v53, %v1127_v54  ;;  %v1545_v57 = vpop.f32.mrb[1].mxu1 }
 0x759   : > { %v1130_v58 = vpop.f32.mrb[2].mxu1 }
 0x75a   : > { %v1148_v59 = vadd.f32 %v1450_v55, %v1140_v56  ;;  %v1546_v60 = vpop.f32.mrb[3].mxu1 }
 0x75c   : > { %v1149_v61 = vmax.f32 %v1148_v59, 0.0 }
 0x75e   : > { %1150 = vst [vmem:[%s689_s24] sm:$0xff] %v1149_v61 }
 0x75f PF: > { %s2907_s16 = sld [smem:[#allocation33_spill]]  ;;  %s2908_s20 = sld [smem:[#allocation36_spill]] }
 0x760   : > { %s2909_s6 = sld [smem:[#allocation52_spill]]  ;;  %s1170_s29 = sshll.u32 %s689_s24, 4  ;;  %s1171_s29 = int_to_ptr.vmem [resolvable:$true] %s1170_s29 }
 0x761   : > { %s1152_s15 = scalar_lea.sflag [#allocation9], %s2586_s10  ;;  %s1924_s8 = scalar_lea.vmem %s1171_s29, 128 }
 0x762   : > { %p1925_p12 = scmp.ne.s32.totalorder %s1171_s29, %s1924_s8  ;;  %s2114_s3 = smov [#allocation19]  }
 0x763   : > { %s1928_s13 = sshll.u32 %s2114_s3, 4  ;;  %s1929_s13 = int_to_ptr.vmem [resolvable:$false] %s1928_s13 }
 0x764   : > { %s1930_s22 = scalar_lea.vmem %s1929_s13, 256  ;;  %p1931_p8 = scmp.lt.s32.totalorder %s1171_s29, %s1929_s13 }
 0x765   : > { %s1453_s0 = sshll.u32 %s2907_s16, 7  ;;  %p2910_p4 = scmp.ne.s32.totalorder %s2908_s20, 0 }
 0x766   : > { %s2692_s2 = scalar_lea.hbm %s2909_s6, %s1453_s0  ;;  %p1932_p9 = scmp.lt.s32.totalorder %s1930_s22, %s1924_s8 }
 0x767   : > { %p1926_p3 = pnand %p1925_p12, %p2910_p4 }
 0x768   : > { %p1933_p6 = por %p1932_p9, %p1931_p8 }
 0x769   : > { %p1927_p0 = pneg %p1926_p3 }
 0x76b   : > { %p1934_p2 = pnand %p1933_p6, %p1927_p0 }
 0x76d   : > { %1937 = shalt.err (!%p1934_p2)
}
 0x76e   : > { %s1938_s24 = scalar_lea.hbm %s2692_s2, 128  ;;  %s1942_s14 = scalar_lea.hbm %s2909_s6, 256 }
 0x76f   : > { %p1939_p5 = scmp.ne.s32.totalorder %s2692_s2, %s1938_s24  ;;  %p1943_p7 = scmp.lt.u32.totalorder %s2692_s2, %s2909_s6 }
 0x770   : > { %p1944_p1 = scmp.lt.u32.totalorder %s1942_s14, %s1938_s24  ;;  %p1946_p12 = scmp.lt.u32.totalorder %s1938_s24, %s2692_s2 }
 0x771   : > { %p1940_p11 = pnand %p1939_p5, %p2910_p4 }
 0x772   : > { %p1945_p13 = por %p1944_p1, %p1943_p7 }
 0x773   : > { %p1941_p10 = pneg %p1940_p11 }
 0x774   : > { %p1947_p3 = por %p1946_p12, %p1945_p13 }
 0x776   : > { %p1948_p0 = pnand %p1947_p3, %p1941_p10 }
 0x778   : > { %1951 = shalt.err (!%p1948_p0)
}
 0x779   : > { %1565 = dma.vmem_to_hbm [thread:$0]  (%p2910_p4), %s1171_s29, 128, %s2692_s2, %s1152_s15  }
 0x77a   : > { %s2911_s21 = sld [smem:[#allocation53_spill]]  ;;  %s1183_s3 = sshll.u32 %s696_s19, 4  ;;  %s1184_s3 = int_to_ptr.vmem [resolvable:$true] %s1183_s3 }
 0x77b   : > { %s1157_s13 = scalar_lea.sflag [#allocation21], %s2586_s10  ;;  %s1952_s22 = scalar_lea.vmem %s1184_s3, 128 }
 0x77c   : > { %p1953_p8 = scmp.ne.s32.totalorder %s1184_s3, %s1952_s22  ;;  %s2115_s24 = smov [#allocation20]  }
 0x77d   : > { %s1956_s9 = sshll.u32 %s2115_s24, 4  ;;  %s1957_s9 = int_to_ptr.vmem [resolvable:$false] %s1956_s9 }
 0x77e   : > { %p1954_p9 = pnand %p1953_p8, %p2910_p4  ;;  %s1958_s26 = scalar_lea.vmem %s1957_s9, 256 }
 0x77f   : > { %p1959_p2 = scmp.lt.s32.totalorder %s1184_s3, %s1957_s9  ;;  %p1960_p5 = scmp.lt.s32.totalorder %s1958_s26, %s1952_s22 }
 0x780   : > { %s2719_s8 = scalar_lea.hbm %s2911_s21, %s1453_s0  ;;  %p1955_p6 = pneg %p1954_p9 }
 0x781   : > { %p1961_p11 = por %p1960_p5, %p1959_p2 }
 0x783   : > { %p1962_p10 = pnand %p1961_p11, %p1955_p6 }
 0x785   : > { %1965 = shalt.err (!%p1962_p10)
}
 0x786   : > { %s1966_s10 = scalar_lea.hbm %s2719_s8, 128  ;;  %s1970_s16 = scalar_lea.hbm %s2911_s21, 256 }
 0x787   : > { %p1967_p7 = scmp.ne.s32.totalorder %s2719_s8, %s1966_s10  ;;  %p1971_p12 = scmp.lt.u32.totalorder %s2719_s8, %s2911_s21 }
 0x788   : > { %p1972_p3 = scmp.lt.u32.totalorder %s1970_s16, %s1966_s10  ;;  %p1974_p8 = scmp.lt.u32.totalorder %s1966_s10, %s2719_s8 }
 0x789   : > { %p1968_p1 = pnand %p1967_p7, %p2910_p4 }
 0x78a   : > { %p1973_p0 = por %p1972_p3, %p1971_p12 }
 0x78b   : > { %p1969_p13 = pneg %p1968_p1 }
 0x78c   : > { %p1975_p9 = por %p1974_p8, %p1973_p0 }
 0x78e   : > { %p1976_p6 = pnand %p1975_p9, %p1969_p13 }
 0x790   : > { %1979 = shalt.err (!%p1976_p6)
}
 0x791   : > { %1566 = dma.vmem_to_hbm [thread:$0]  (%p2910_p4), %s1184_s3, 128, %s2719_s8, %s1157_s13  }
 0x792 PF: > { %s2912_s29 = sld [smem:[#allocation31_spill]]  ;;  %s2913_s15 = sld [smem:[#allocation37_spill]] }
 0x793   : > { %p1604_p2 = scmp.ge.s32.totalorder %s2096_s18, 2 }
 0x798   : > { %s1195_s14 = sand.u32 1, %s2912_s29   ;;  %p2914_p5 = scmp.ne.s32.totalorder %s2913_s15, 0 }
 0x799   : > { %s1196_s12 = scalar_lea.sflag [#allocation9], %s1195_s14 }
 0x79a   : > { %p1593_p11 = pnand %p1604_p2, %p2914_p5 }
 0x79c   : > { %2047 = dma.done.wait (!%p1593_p11), %s1196_s12, 128  }
 0x79d   : > { %2049 = vsyncadd (!%p1593_p11), %s1196_s12, 4294967168  ;;  %s1205_s4 = scalar_lea.sflag [#allocation21], %s1195_s14 }
 0x79e   : > { %2051 = dma.done.wait (!%p1593_p11), %s1205_s4, 128  }
 0x79f   : > { %2053 = vsyncadd (!%p1593_p11), %s1205_s4, 4294967168  ;;  %s49_s18 = sadd.s32 1, %s2096_s18   ;;  %s2915_s0 = sld [smem:[#allocation30_spill]] }
 0x7a0   : > { %p46_p10 = scmp.ge.s32.totalorder %s49_s18, 6   ;;  %s2916_s20 = sld [smem:[#allocation42_spill]] }
 0x7a1   : > { %s2917_s23 = sld [smem:[#allocation41_spill]]  ;;  %s2918_s29 = sld [smem:[#allocation34_spill]] }
 0x7a2   : > { %s2919_s16 = sld [smem:[#allocation38_spill]]  ;;  %s2920_s8 = sld [smem:[#allocation40_spill]] }
 0x7a3   : > { %s2921_s1 = smov %s2064_s25  ;;  %s2923_s26 = smov %s2072_s27 }
 0x7a4   : > { %s2924_s27 = smov %s2076_s28  ;;  %s2926_s30 = smov %s2092_s17 }
 0x7a5   :  { %48 = sbr.rel (!%p46_p10) target bundleno = 35 (0x23), region = 202 }
 0x7a6   : > { %s2922_s25 = smov %s2916_s20 }
 0x7a7   : > { %s2925_s28 = smov %s2917_s23 }
 0x7a8   : > { %s2927_s17 = smov %s2920_s8 }
 0x7ac   :  { %1210 = vsyncpa [#allocation8], 1 }
 0x7ad   :  { %1212 = vsyncpa [#allocation8 + $0x1], 1 }
 0x7ae   :  { %1213 = vsyncpa [#allocation11], 1 }
 0x7af   :  { %1215 = vsyncpa [#allocation11 + $0x1], 1 }
 0x7b0   :  { %1216 = vsyncpa [#allocation14], 1 }
 0x7b1   :  { %1218 = vsyncpa [#allocation14 + $0x1], 1 }
 0x7b2   :  { %1219 = vsyncpa [#allocation17], 1 }
 0x7b3   :  { %1220 = vsyncpa [#allocation9], 1 }
 0x7b4   :  { %1222 = vsyncpa [#allocation9 + $0x1], 1 }
 0x7b5   :  { %1223 = vsyncpa [#allocation21], 1 }
 0x7b6   :  { %1225 = vsyncpa [#allocation21 + $0x1], 1 }

</bundles_post_ra>
